<compile_context>
chip_gen: v7x
topology: tpu7x:2x2x1
jax: 0.10.0
libtpu: 0.0.40
codegen_flags: <defaults>
</compile_context>

<pallas_src>
import jax
import jax.numpy as jnp
import numpy as np
from jax import lax
from jax.experimental import pallas as pl
from jax.experimental.pallas import tpu as pltpu

LANE = 128      # TPU lane width; channel dims padded to a multiple of this.
SUBLANE = 8
K = 3           # RepVGGBlock asserts kernel_size == 3, padding == 1


def _round_up(x, m):
    return (x + m - 1) // m * m


def _vmem_capacity_bytes():
    try:
        return int(pltpu.get_tpu_info().vmem_capacity_bytes)
    except Exception:
        return 64 << 20          # conservative (v7x physical VMEM)


# -----------------------------------------------------------------------------------
# Wrapper-side RepVGG reparameterization (tiny weight tensors; mirrors
# RepVGGBlock.get_equivalent_kernel_bias with eval-mode BatchNorm).
# -----------------------------------------------------------------------------------
def _fuse_conv_bn(w_oihw, bn, eps):
    gamma, beta, mean, var = bn
    scale = gamma / jnp.sqrt(var + eps)
    return w_oihw * scale[:, None, None, None], beta - mean * scale


def _equivalent_kernel_bias(params, c1, c2, eps):
    w3, b3 = _fuse_conv_bn(params["w3"], params["bn3"], eps)          # 3x3 branch
    w1, b1 = _fuse_conv_bn(params["w1"], params["bn1"], eps)          # 1x1 branch
    w_eq = w3 + jnp.pad(w1, ((0, 0), (0, 0), (1, 1), (1, 1)))
    b_eq = b3 + b1
    bn_id = params.get("bn_id")
    if bn_id is not None:                                             # identity-BN branch
        gamma, beta, mean, var = bn_id
        scale = gamma / jnp.sqrt(var + eps)
        i = jnp.arange(c2)
        w_id = jnp.zeros((c2, c1, K, K), jnp.float32).at[i, i % c1, 1, 1].set(scale)
        w_eq = w_eq + w_id
        b_eq = b_eq + (beta - mean * scale)
    return w_eq, b_eq                                                 # OIHW f32, (C2,) f32


# -----------------------------------------------------------------------------------
# Pallas kernel: fused 3x3 conv (3 W-shifted copies -> 3 deep MXU matmuls) + bias + ReLU
# -----------------------------------------------------------------------------------
def _make_kernel(TH, W, C1p, TC2):
    PADL, PADR = 16, 16            # left/right zero strips of the in-VMEM padded band
    R = TH + 2                     # H-extended band rows (1 halo row above and below)

    def kernel(xm_ref, xt_ref, xb_ref, w_ref, b_ref, o_ref, band_ref, col_ref):
        # xm_ref:   (1, TH, W, C1p) bf16   main rows of this output-row tile
        # xt_ref:   (1, 1,  W, C1p) bf16   row above the tile (zeroed at image top)
        # xb_ref:   (1, 1,  W, C1p) bf16   row below the tile (zeroed at image bottom)
        # w_ref:    (K, K*C1p, TC2) bf16   reparameterized weights (per-kh slabs)
        # b_ref:    (1, TC2)        f32    fused bias
        # o_ref:    (1, TH, W, TC2) bf16
        # band_ref: (R, PADL+W+PADR, C1p) bf16   zero-padded band (VMEM scratch)
        # col_ref:  (R*W, K*C1p)    bf16   3 W-shifted copies (VMEM scratch)
        h = pl.program_id(1)

        @pl.when(pl.program_id(2) == 0)          # band/col depend only on (n, h)
        def _build():
            zt = (h > 0).astype(band_ref.dtype)                          # top border
            zb = (h < pl.num_programs(1) - 1).astype(band_ref.dtype)     # bottom border
            # zero pad strips (only cols PADL-1 and PADL+W are ever read as the W border)
            band_ref[:, 0:PADL, :] = jnp.zeros((R, PADL, C1p), band_ref.dtype)
            band_ref[:, PADL + W:PADL + W + PADR, :] = jnp.zeros(
                (R, PADR, C1p), band_ref.dtype)
            # assemble the H-extended band (all stores lane/sublane aligned)
            band_ref[0:1, PADL:PADL + W, :] = xt_ref[0] * zt
            band_ref[1:TH + 1, PADL:PADL + W, :] = xm_ref[0]
            band_ref[TH + 1:R, PADL:PADL + W, :] = xb_ref[0] * zb
            # 3 W-shifted copies -> contraction depth K*C1p per matmul (>= 384)
            for kw in range(K):
                c0 = kw * C1p
                col_ref[:, c0:c0 + C1p] = band_ref[
                    :, PADL - 1 + kw:PADL - 1 + kw + W, :].reshape(R * W, C1p)

        # 3 matmuls (one per kh), each (TH*W, K*C1p) x (K*C1p, TC2), f32 accumulation.
        acc = jnp.dot(col_ref[0:TH * W, :], w_ref[0],
                      preferred_element_type=jnp.float32)
        for kh in range(1, K):
            acc = acc + jnp.dot(col_ref[kh * W:(kh + TH) * W, :], w_ref[kh],
                                preferred_element_type=jnp.float32)
        y = jnp.maximum(acc + b_ref[...], 0.0)                      # f32 bias + ReLU
        o_ref[0] = y.reshape(TH, W, TC2).astype(o_ref.dtype)        # bf16 store

    return kernel


def repvgg_block_forward_nhwc(x, params, *, stride=1, eps=1e-5, th=None):
    """Core entry point: x (N, H, W, C1p) bf16 NHWC, channels zero-padded to x128.
    Returns (N, H, W, C2p) bf16 NHWC (padded output channels are zero)."""
    if stride != 1:
        raise NotImplementedError("TODO(synk): stride=2 path not implemented")
    N, H, W, C1p = x.shape
    C2, C1 = params["w3"].shape[:2]
    assert C1p == _round_up(C1, LANE), "input channels must be zero-padded to x128"
    if W % SUBLANE:
        raise NotImplementedError("TODO(synk): W % 8 != 0 stages (e.g. 7x7) unsupported")
    C2p = _round_up(C2, LANE)
    x = x.astype(jnp.bfloat16)

    # ---- branch fusion + BN folding (f32 on tiny weights), then bf16 for the MXU ----
    w_eq, b_eq = _equivalent_kernel_bias(params, C1, C2, eps)      # OIHW f32
    w_hwio = jnp.transpose(w_eq, (2, 3, 1, 0))                     # (K, K, C1, C2)
    w3d = jnp.pad(w_hwio, ((0, 0), (0, 0), (0, C1p - C1), (0, C2p - C2))
                  ).reshape(K, K * C1p, C2p).astype(jnp.bfloat16)  # per-kh (K*C1p, C2p)
    b2d = jnp.pad(b_eq, (0, C2p - C2)).reshape(1, C2p).astype(jnp.float32)

    vmem_phys = _vmem_capacity_bytes()
    vmem_budget = int(vmem_phys * 0.75)

    # ---- C2 tile: keep the double-buffered weight slab well inside VMEM (v7x 64MiB) --
    wt_cap = vmem_budget // 3
    TC2 = C2p
    while TC2 > LANE and (C2p % TC2 or 2 * K * K * C1p * TC2 * 2 > wt_cap):
        TC2 -= LANE
    n_c2 = C2p // TC2

    # ---- output-row tile: largest TH that fits, but keep >= 2 parallel grid steps ----
    def est_vmem(th_):
        r = th_ + 2
        return (2 * th_ * W * C1p * 2          # main band (double-buffered) bf16
                + 2 * 2 * W * C1p * 2          # top + bottom halo rows
                + 2 * K * K * C1p * TC2 * 2    # weights
                + 2 * TC2 * 4                  # bias
                + 2 * th_ * W * TC2 * 2        # bf16 output tile
                + r * (W + 32) * C1p * 2       # padded band scratch
                + r * W * K * C1p * 2          # im2col scratch (3 shifted copies)
                + th_ * W * TC2 * 4)           # f32 accumulator headroom

    cands = [c for c in (64, 56, 32, 28, 16, 14, 8, 7, 4, 2, 1)
             if H % c == 0 and est_vmem(c) <= vmem_budget] or [1]
    if th is not None:
        TH = th
    else:
        multi = [c for c in cands if N * (H // c) >= 2]    # feed both v7x TensorCores
        TH = (multi or cands)[0]
    n_h = H // TH

    vmem_limit = int(min(vmem_budget, max(32 << 20, 2 * est_vmem(TH))))

    cost = pl.CostEstimate(
        flops=2 * N * H * W * K * K * C1p * C2p,
        transcendentals=0,
        bytes_accessed=(N * H * W * C1p * 2 + K * K * C1p * C2p * 2
                        + C2p * 4 + N * H * W * C2p * 2))

    out = pl.pallas_call(
        _make_kernel(TH, W, C1p, TC2),
        out_shape=jax.ShapeDtypeStruct((N, H, W, C2p), jnp.bfloat16),
        grid=(N, n_h, n_c2),
        in_specs=[
            # main input band: rows [h*TH, h*TH + TH)
            pl.BlockSpec((1, TH, W, C1p), lambda n, h, c: (n, h, 0, 0)),
            # halo row above the band (clamped at the top edge; zeroed in-kernel)
            pl.BlockSpec((1, 1, W, C1p),
                         lambda n, h, c: (n, jnp.maximum(h * TH - 1, 0), 0, 0)),
            # halo row below the band (clamped at the bottom edge; zeroed in-kernel)
            pl.BlockSpec((1, 1, W, C1p),
                         lambda n, h, c: (n, jnp.minimum((h + 1) * TH, H - 1), 0, 0)),
            # weights / bias: constant over (n, h); streamed over the C2 tile axis
            pl.BlockSpec((K, K * C1p, TC2), lambda n, h, c: (0, 0, c)),
            pl.BlockSpec((1, TC2), lambda n, h, c: (0, c)),
        ],
        out_specs=pl.BlockSpec((1, TH, W, TC2), lambda n, h, c: (n, h, 0, c)),
        scratch_shapes=[
            pltpu.VMEM((TH + 2, W + 32, C1p), jnp.bfloat16),       # padded band
            pltpu.VMEM(((TH + 2) * W, K * C1p), jnp.bfloat16),     # 3 shifted copies
        ],
        compiler_params=pltpu.CompilerParams(
            dimension_semantics=("parallel", "parallel", "arbitrary"),
            vmem_limit_bytes=vmem_limit),
        cost_estimate=cost,
    )(x, x, x, w3d, b2d)
    return out


def repvgg_block_forward_nchw(x_nchw, params, *, stride=1, eps=1e-5, th=None):
    """Test/demo convenience wrapper.  A real network should keep activations
    NHWC + bf16 + channel-padded across blocks so these layout passes never hit HBM."""
    N, C1, H, W = x_nchw.shape
    C2 = params["w3"].shape[0]
    C1p = _round_up(C1, LANE)
    x = jnp.transpose(x_nchw, (0, 2, 3, 1))
    x = jnp.pad(x, ((0, 0), (0, 0), (0, 0), (0, C1p - C1))).astype(jnp.bfloat16)
    y = repvgg_block_forward_nhwc(x, params, stride=stride, eps=eps, th=th)
    return jnp.transpose(y[..., :C2], (0, 3, 1, 2)).astype(jnp.float32)


# -----------------------------------------------------------------------------------
# References
# -----------------------------------------------------------------------------------
def _conv(x, w_oihw, stride, pad):
    return lax.conv_general_dilated(
        x, w_oihw, window_strides=(stride, stride),
        padding=((pad, pad), (pad, pad)),
        dimension_numbers=("NCHW", "OIHW", "NCHW"),
        precision=lax.Precision.HIGHEST)


def _bn(y, gamma, beta, mean, var, eps):
    inv = gamma / jnp.sqrt(var + eps)
    return y * inv[None, :, None, None] + (beta - mean * inv)[None, :, None, None]


def _reference_module(x, params, *, eps=1e-5):
    """Branch-by-branch f32 reference == RepVGGBlock.forward (eval BN, use_se=False)."""
    y = _bn(_conv(x, params["w3"], 1, 1), *params["bn3"], eps)
    y = y + _bn(_conv(x, params["w1"], 1, 0), *params["bn1"], eps)
    if params.get("bn_id") is not None:
        y = y + _bn(x, *params["bn_id"], eps)
    return jnp.maximum(y, 0.0)


def _reference_quantized(x, params, *, eps=1e-5):
    """Same fused conv as the kernel, with operands rounded to bf16 (tight check)."""
    c2, c1 = params["w3"].shape[:2]
    w_eq, b_eq = _equivalent_kernel_bias(params, c1, c2, eps)
    xq = x.astype(jnp.bfloat16).astype(jnp.float32)
    wq = w_eq.astype(jnp.bfloat16).astype(jnp.float32)
    y = _conv(xq, wq, 1, 1) + b_eq[None, :, None, None]
    return jnp.maximum(y, 0.0)


if __name__ == "__main__":
    # in_channels == out_channels and stride == 1 -> all three RepVGG branches active.
    N, C, H, W = 2, 4, 16, 16
    key = jax.random.PRNGKey(0)
    ks = jax.random.split(key, 6)

    def bn_params(k, c):
        k1, k2, k3, k4 = jax.random.split(k, 4)
        return (1.0 + 0.1 * jax.random.normal(k1, (c,), jnp.float32),           # gamma
                0.1 * jax.random.normal(k2, (c,), jnp.float32),                 # beta
                0.1 * jax.random.normal(k3, (c,), jnp.float32),                 # running_mean
                jnp.abs(1.0 + 0.1 * jax.random.normal(k4, (c,), jnp.float32)))  # running_var

    x = jax.random.normal(ks[0], (N, C, H, W), jnp.float32)
    params = {
        "w3": 0.1 * jax.random.normal(ks[1], (C, C, 3, 3), jnp.float32),
        "bn3": bn_params(ks[2], C),
        "w1": 0.1 * jax.random.normal(ks[3], (C, C, 1, 1), jnp.float32),
        "bn1": bn_params(ks[4], C),
        "bn_id": bn_params(ks[5], C),     # present: C_in == C_out and stride == 1
    }

    out = jax.block_until_ready(jax.jit(repvgg_block_forward_nchw)(x, params))
    assert out.shape == (N, C, H, W), out.shape

    # Tight check: identical bf16-rounded operands, f32 accumulation (+ bf16 output).
    np.testing.assert_allclose(np.asarray(out),
                               np.asarray(_reference_quantized(x, params)),
                               rtol=1e-2, atol=2e-2)
    # Loose check against pure-f32 module semantics (bf16-operand tolerance).
    np.testing.assert_allclose(np.asarray(out),
                               np.asarray(_reference_module(x, params)),
                               rtol=3e-2, atol=1e-1)
    print("KERNEL_OK")
</pallas_src>

<mosaic_0001>
module attributes {stable_mosaic.version = 11 : i64} {
  func.func @kernel(%arg0: i32, %arg1: i32, %arg2: i32, %arg3: memref<1x16x16x128xbf16, #tpu.memory_space<vmem>>, %arg4: memref<1x1x16x128xbf16, #tpu.memory_space<vmem>>, %arg5: memref<1x1x16x128xbf16, #tpu.memory_space<vmem>>, %arg6: memref<3x384x128xbf16, #tpu.memory_space<vmem>>, %arg7: memref<1x128xf32, #tpu.memory_space<vmem>>, %arg8: memref<1x16x16x128xbf16, #tpu.memory_space<vmem>>, %arg9: memref<18x48x128xbf16, #tpu.memory_space<vmem>>, %arg10: memref<288x384xbf16, #tpu.memory_space<vmem>>) attributes {dimension_semantics = [#tpu.dimension_semantics<parallel>, #tpu.dimension_semantics<parallel>, #tpu.dimension_semantics<arbitrary>], iteration_bounds = array<i64: 2, 1, 1>, scalar_prefetch = 0 : i64, scratch_operands = 2 : i64, tpu.core_type = #tpu.core_type<tc>, window_params = [{transform_indices = @transform_0, window_bounds = array<i64: 1, 16, 16, 128>}, {transform_indices = @transform_1, window_bounds = array<i64: 1, 1, 16, 128>}, {transform_indices = @transform_2, window_bounds = array<i64: 1, 1, 16, 128>}, {transform_indices = @transform_3, window_bounds = array<i64: 3, 384, 128>}, {transform_indices = @transform_4, window_bounds = array<i64: 1, 128>}, {transform_indices = @transform_5, window_bounds = array<i64: 1, 16, 16, 128>}]} {
    %c0_i32 = arith.constant 0 : i32
    %0 = arith.cmpi eq, %arg2, %c0_i32 : i32
    %1 = arith.extui %0 : i1 to i32
    %c0_i32_0 = arith.constant 0 : i32
    %2 = arith.cmpi ne, %1, %c0_i32_0 : i32
    scf.if %2 {
      %c0_i32_20 = arith.constant 0 : i32
      %27 = arith.cmpi sgt, %arg1, %c0_i32_20 : i32
      %28 = arith.extui %27 : i1 to i32
      %29 = arith.sitofp %28 : i32 to f32
      %30 = arith.truncf %29 : f32 to bf16
      %c0_i32_21 = arith.constant 0 : i32
      %31 = arith.cmpi slt, %arg1, %c0_i32_21 : i32
      %32 = arith.extui %31 : i1 to i32
      %33 = arith.sitofp %32 : i32 to f32
      %34 = arith.truncf %33 : f32 to bf16
      %cst_22 = arith.constant 0.000000e+00 : bf16
      %35 = vector.broadcast %cst_22 : bf16 to vector<18x16x128xbf16>
      %c0_23 = arith.constant 0 : index
      %c0_24 = arith.constant 0 : index
      %c0_25 = arith.constant 0 : index
      %36 = vector.load %arg9[%c0_23, %c0_24, %c0_25] : memref<18x48x128xbf16, #tpu.memory_space<vmem>>, vector<18x16x128xbf16>
      tpu.vector_store %arg9[%c0_23, %c0_24, %c0_25], %35 {strides = array<i32>} : memref<18x48x128xbf16, #tpu.memory_space<vmem>>, vector<18x16x128xbf16>,
      %cst_26 = arith.constant 0.000000e+00 : bf16
      %37 = vector.broadcast %cst_26 : bf16 to vector<18x16x128xbf16>
      %c0_27 = arith.constant 0 : index
      %c32_28 = arith.constant 32 : index
      %c0_29 = arith.constant 0 : index
      %38 = vector.load %arg9[%c0_27, %c32_28, %c0_29] : memref<18x48x128xbf16, #tpu.memory_space<vmem>>, vector<18x16x128xbf16>
      tpu.vector_store %arg9[%c0_27, %c32_28, %c0_29], %37 {strides = array<i32>} : memref<18x48x128xbf16, #tpu.memory_space<vmem>>, vector<18x16x128xbf16>,
      %c0_30 = arith.constant 0 : index
      %c0_31 = arith.constant 0 : index
      %c0_32 = arith.constant 0 : index
      %c0_33 = arith.constant 0 : index
      %39 = vector.load %arg4[%c0_30, %c0_31, %c0_32, %c0_33] : memref<1x1x16x128xbf16, #tpu.memory_space<vmem>>, vector<1x1x16x128xbf16>
      %40 = vector.shape_cast %39 : vector<1x1x16x128xbf16> to vector<1x16x128xbf16>
      %41 = vector.broadcast %30 : bf16 to vector<1x16x128xbf16>
      %42 = arith.mulf %40, %41 : vector<1x16x128xbf16>
      %c0_34 = arith.constant 0 : index
      %c16_35 = arith.constant 16 : index
      %c0_36 = arith.constant 0 : index
      %43 = vector.load %arg9[%c0_34, %c16_35, %c0_36] : memref<18x48x128xbf16, #tpu.memory_space<vmem>>, vector<1x16x128xbf16>
      tpu.vector_store %arg9[%c0_34, %c16_35, %c0_36], %42 {strides = array<i32>} : memref<18x48x128xbf16, #tpu.memory_space<vmem>>, vector<1x16x128xbf16>,
      %c0_37 = arith.constant 0 : index
      %c0_38 = arith.constant 0 : index
      %c0_39 = arith.constant 0 : index
      %c0_40 = arith.constant 0 : index
      %44 = vector.load %arg3[%c0_37, %c0_38, %c0_39, %c0_40] : memref<1x16x16x128xbf16, #tpu.memory_space<vmem>>, vector<1x16x16x128xbf16>
      %45 = vector.shape_cast %44 : vector<1x16x16x128xbf16> to vector<16x16x128xbf16>
      %c1_41 = arith.constant 1 : index
      %c16_42 = arith.constant 16 : index
      %c0_43 = arith.constant 0 : index
      %46 = vector.load %arg9[%c1_41, %c16_42, %c0_43] : memref<18x48x128xbf16, #tpu.memory_space<vmem>>, vector<16x16x128xbf16>
      tpu.vector_store %arg9[%c1_41, %c16_42, %c0_43], %45 {strides = array<i32>} : memref<18x48x128xbf16, #tpu.memory_space<vmem>>, vector<16x16x128xbf16>,
      %c0_44 = arith.constant 0 : index
      %c0_45 = arith.constant 0 : index
      %c0_46 = arith.constant 0 : index
      %c0_47 = arith.constant 0 : index
      %47 = vector.load %arg5[%c0_44, %c0_45, %c0_46, %c0_47] : memref<1x1x16x128xbf16, #tpu.memory_space<vmem>>, vector<1x1x16x128xbf16>
      %48 = vector.shape_cast %47 : vector<1x1x16x128xbf16> to vector<1x16x128xbf16>
      %49 = vector.broadcast %34 : bf16 to vector<1x16x128xbf16>
      %50 = arith.mulf %48, %49 : vector<1x16x128xbf16>
      %c17 = arith.constant 17 : index
      %c16_48 = arith.constant 16 : index
      %c0_49 = arith.constant 0 : index
      %51 = vector.load %arg9[%c17, %c16_48, %c0_49] : memref<18x48x128xbf16, #tpu.memory_space<vmem>>, vector<1x16x128xbf16>
      tpu.vector_store %arg9[%c17, %c16_48, %c0_49], %50 {strides = array<i32>} : memref<18x48x128xbf16, #tpu.memory_space<vmem>>, vector<1x16x128xbf16>,
      %c0_50 = arith.constant 0 : index
      %c15 = arith.constant 15 : index
      %c0_51 = arith.constant 0 : index
      %52 = vector.load %arg9[%c0_50, %c15, %c0_51] : memref<18x48x128xbf16, #tpu.memory_space<vmem>>, vector<18x16x128xbf16>
      %53 = vector.shape_cast %52 : vector<18x16x128xbf16> to vector<288x128xbf16>
      %c0_52 = arith.constant 0 : index
      %c0_53 = arith.constant 0 : index
      %54 = vector.load %arg10[%c0_52, %c0_53] : memref<288x384xbf16, #tpu.memory_space<vmem>>, vector<288x128xbf16>
      tpu.vector_store %arg10[%c0_52, %c0_53], %53 {strides = array<i32>} : memref<288x384xbf16, #tpu.memory_space<vmem>>, vector<288x128xbf16>,
      %c0_54 = arith.constant 0 : index
      %c16_55 = arith.constant 16 : index
      %c0_56 = arith.constant 0 : index
      %55 = vector.load %arg9[%c0_54, %c16_55, %c0_56] : memref<18x48x128xbf16, #tpu.memory_space<vmem>>, vector<18x16x128xbf16>
      %56 = vector.shape_cast %55 : vector<18x16x128xbf16> to vector<288x128xbf16>
      %c0_57 = arith.constant 0 : index
      %c128 = arith.constant 128 : index
      %57 = vector.load %arg10[%c0_57, %c128] : memref<288x384xbf16, #tpu.memory_space<vmem>>, vector<288x128xbf16>
      tpu.vector_store %arg10[%c0_57, %c128], %56 {strides = array<i32>} : memref<288x384xbf16, #tpu.memory_space<vmem>>, vector<288x128xbf16>,
      %c0_58 = arith.constant 0 : index
      %c17_59 = arith.constant 17 : index
      %c0_60 = arith.constant 0 : index
      %58 = vector.load %arg9[%c0_58, %c17_59, %c0_60] : memref<18x48x128xbf16, #tpu.memory_space<vmem>>, vector<18x16x128xbf16>
      %59 = vector.shape_cast %58 : vector<18x16x128xbf16> to vector<288x128xbf16>
      %c0_61 = arith.constant 0 : index
      %c256 = arith.constant 256 : index
      %60 = vector.load %arg10[%c0_61, %c256] : memref<288x384xbf16, #tpu.memory_space<vmem>>, vector<288x128xbf16>
      tpu.vector_store %arg10[%c0_61, %c256], %59 {strides = array<i32>} : memref<288x384xbf16, #tpu.memory_space<vmem>>, vector<288x128xbf16>,
    } else {
    }
    %c0 = arith.constant 0 : index
    %c0_1 = arith.constant 0 : index
    %3 = vector.load %arg10[%c0, %c0_1] : memref<288x384xbf16, #tpu.memory_space<vmem>>, vector<256x384xbf16>
    %c0_2 = arith.constant 0 : index
    %c0_3 = arith.constant 0 : index
    %c0_4 = arith.constant 0 : index
    %4 = vector.load %arg6[%c0_2, %c0_3, %c0_4] : memref<3x384x128xbf16, #tpu.memory_space<vmem>>, vector<1x384x128xbf16>
    %5 = vector.shape_cast %4 : vector<1x384x128xbf16> to vector<384x128xbf16>
    %cst = arith.constant dense<0.000000e+00> : vector<256x128xf32>
    %6 = tpu.matmul %3, %5, %cst {dimension_numbers = #tpu.dot_dimension_numbers<[1], [0], [0], [1], [0, 0, 1, 1], [], []>} : vector<256x384xbf16>, vector<384x128xbf16>, vector<256x128xf32> -> vector<256x128xf32>
    %c16 = arith.constant 16 : index
    %c0_5 = arith.constant 0 : index
    %7 = vector.load %arg10[%c16, %c0_5] : memref<288x384xbf16, #tpu.memory_space<vmem>>, vector<256x384xbf16>
    %c1 = arith.constant 1 : index
    %c0_6 = arith.constant 0 : index
    %c0_7 = arith.constant 0 : index
    %8 = vector.load %arg6[%c1, %c0_6, %c0_7] : memref<3x384x128xbf16, #tpu.memory_space<vmem>>, vector<1x384x128xbf16>
    %9 = vector.shape_cast %8 : vector<1x384x128xbf16> to vector<384x128xbf16>
    %cst_8 = arith.constant dense<0.000000e+00> : vector<256x128xf32>
    %10 = tpu.matmul %7, %9, %cst_8 {dimension_numbers = #tpu.dot_dimension_numbers<[1], [0], [0], [1], [0, 0, 1, 1], [], []>} : vector<256x384xbf16>, vector<384x128xbf16>, vector<256x128xf32> -> vector<256x128xf32>
    %11 = arith.addf %6, %10 : vector<256x128xf32>
    %c32 = arith.constant 32 : index
    %c0_9 = arith.constant 0 : index
    %12 = vector.load %arg10[%c32, %c0_9] : memref<288x384xbf16, #tpu.memory_space<vmem>>, vector<256x384xbf16>
    %c2 = arith.constant 2 : index
    %c0_10 = arith.constant 0 : index
    %c0_11 = arith.constant 0 : index
    %13 = vector.load %arg6[%c2, %c0_10, %c0_11] : memref<3x384x128xbf16, #tpu.memory_space<vmem>>, vector<1x384x128xbf16>
    %14 = vector.shape_cast %13 : vector<1x384x128xbf16> to vector<384x128xbf16>
    %cst_12 = arith.constant dense<0.000000e+00> : vector<256x128xf32>
    %15 = tpu.matmul %12, %14, %cst_12 {dimension_numbers = #tpu.dot_dimension_numbers<[1], [0], [0], [1], [0, 0, 1, 1], [], []>} : vector<256x384xbf16>, vector<384x128xbf16>, vector<256x128xf32> -> vector<256x128xf32>
    %16 = arith.addf %11, %15 : vector<256x128xf32>
    %c0_13 = arith.constant 0 : index
    %c0_14 = arith.constant 0 : index
    %17 = vector.load %arg7[%c0_13, %c0_14] : memref<1x128xf32, #tpu.memory_space<vmem>>, vector<1x128xf32>
    %18 = vector.broadcast %17 : vector<1x128xf32> to vector<256x128xf32>
    %19 = arith.addf %16, %18 : vector<256x128xf32>
    %cst_15 = arith.constant 0.000000e+00 : f32
    %20 = vector.broadcast %cst_15 : f32 to vector<256x128xf32>
    %21 = arith.maximumf %19, %20 : vector<256x128xf32>
    %22 = vector.shape_cast %21 : vector<256x128xf32> to vector<16x16x128xf32>
    %23 = arith.truncf %22 : vector<16x16x128xf32> to vector<16x16x128xbf16>
    %c0_16 = arith.constant 0 : index
    %c0_17 = arith.constant 0 : index
    %c0_18 = arith.constant 0 : index
    %c0_19 = arith.constant 0 : index
    %24 = vector.load %arg8[%c0_16, %c0_17, %c0_18, %c0_19] : memref<1x16x16x128xbf16, #tpu.memory_space<vmem>>, vector<1x16x16x128xbf16>
    %25 = vector.shape_cast %24 : vector<1x16x16x128xbf16> to vector<16x16x128xbf16>
    %26 = vector.shape_cast %23 : vector<16x16x128xbf16> to vector<1x16x16x128xbf16>
    tpu.vector_store %arg8[%c0_16, %c0_17, %c0_18, %c0_19], %26 {strides = array<i32>} : memref<1x16x16x128xbf16, #tpu.memory_space<vmem>>, vector<1x16x16x128xbf16>,
    return
  }
  func.func @transform_0(%arg0: i32, %arg1: i32, %arg2: i32) -> (i32, i32, i32, i32) {
    %c0_i32 = arith.constant 0 : i32
    %c0_i32_0 = arith.constant 0 : i32
    %c0_i32_1 = arith.constant 0 : i32
    return %arg0, %arg1, %c0_i32, %c0_i32_0 : i32, i32, i32, i32
  }
  func.func @transform_1(%arg0: i32, %arg1: i32, %arg2: i32) -> (i32, i32, i32, i32) {
    %c16_i32 = arith.constant 16 : i32
    %0 = arith.muli %arg1, %c16_i32 : i32
    %c1_i32 = arith.constant 1 : i32
    %1 = arith.subi %0, %c1_i32 : i32
    %c0_i32 = arith.constant 0 : i32
    %2 = arith.maxsi %1, %c0_i32 : i32
    %c0_i32_0 = arith.constant 0 : i32
    %c0_i32_1 = arith.constant 0 : i32
    %c0_i32_2 = arith.constant 0 : i32
    return %arg0, %2, %c0_i32_0, %c0_i32_1 : i32, i32, i32, i32
  }
  func.func @transform_2(%arg0: i32, %arg1: i32, %arg2: i32) -> (i32, i32, i32, i32) {
    %c1_i32 = arith.constant 1 : i32
    %0 = arith.addi %arg1, %c1_i32 : i32
    %c16_i32 = arith.constant 16 : i32
    %1 = arith.muli %0, %c16_i32 : i32
    %c15_i32 = arith.constant 15 : i32
    %2 = arith.minsi %1, %c15_i32 : i32
    %c0_i32 = arith.constant 0 : i32
    %c0_i32_0 = arith.constant 0 : i32
    %c0_i32_1 = arith.constant 0 : i32
    return %arg0, %2, %c0_i32, %c0_i32_0 : i32, i32, i32, i32
  }
  func.func @transform_3(%arg0: i32, %arg1: i32, %arg2: i32) -> (i32, i32, i32) {
    %c0_i32 = arith.constant 0 : i32
    %c0_i32_0 = arith.constant 0 : i32
    %c0_i32_1 = arith.constant 0 : i32
    return %c0_i32, %c0_i32_0, %arg2 : i32, i32, i32
  }
  func.func @transform_4(%arg0: i32, %arg1: i32, %arg2: i32) -> (i32, i32) {
    %c0_i32 = arith.constant 0 : i32
    %c0_i32_0 = arith.constant 0 : i32
    return %c0_i32, %arg2 : i32, i32
  }
  func.func @transform_5(%arg0: i32, %arg1: i32, %arg2: i32) -> (i32, i32, i32, i32) {
    %c0_i32 = arith.constant 0 : i32
    %c0_i32_0 = arith.constant 0 : i32
    return %arg0, %arg1, %c0_i32, %arg2 : i32, i32, i32, i32
  }
}

</mosaic_0001>

<bundles_post_ra>
// kernel: repvgg_block_forward_nchw.1
= control target key start
LH: loop header
LB: loop body
LE: loop exit
PB: predicated region body
PF: predicated region fallthrough
CT: control target
= control target key end

     0   :  { %s4654_s18 = smov 0   ;;  %s4656_s19 = smov 0   ;;  %s5700_s0 = inlined_call_operand.vmem [shape: bf16[2,16,16,128], index: 0, kind: input, shape index: {}, may-alias: {0,1,2}]   ;;  %s5701_s1 = inlined_call_operand.vmem [shape: bf16[2,16,16,128], index: 1, kind: input, shape index: {}, may-alias: {0,1,2}]   ;;  %s5702_s2 = inlined_call_operand.vmem [shape: bf16[2,16,16,128], index: 2, kind: input, shape index: {}, may-alias: {0,1,2}]   ;;  %s5703_s3 = inlined_call_operand.vmem [shape: bf16[3,384,128], index: 3, kind: input, shape index: {}]   ;;  %s5704_s4 = inlined_call_operand.vmem [shape: f32[1,128], index: 4, kind: input, shape index: {}]   ;;  %s5705_s5 = inlined_call_operand.vmem [shape: bf16[2,16,16,128], index: 5, kind: output, shape index: {}]  }
   0x1   :  { %s4658_s20 = smov 0  }
   0x2 LB: > { %s34_s21 = sadd.s32 1, %s4617_s19  ;;  %p3386_p0 = scmp.ge.s32.totalorder %s4621_s20, 1  ;;  %s4621_s20 = sphi %s4658_s20, %s15_s20   ;;  %s4617_s19 = sphi %s4656_s19, %s5707_s19   ;;  %s4613_s18 = sphi %s4654_s18, %s5706_s18  }
   0x3   : > { %p36_p1 = scmp.ge.s32.totalorder %s34_s21, 2  ;;  %p299_p2 = scmp.lt.s32.totalorder %s4621_s20, 3 }
   0x5   : > { %s5709_s21 = smov (%p36_p1, %s34_s21), 0  ;;  %p300_p3 = pnand %p3386_p0, %p299_p2 }
   0x6   : > { %v4502_v0 = vld [vmem:[%s5703_s3 + $0x100] sm:$0xff] (!%p300_p3)   ;;  %v4623_v3 = vmov (!%p300_p3), 0   ;;  %v4505_v4 = vld [vmem:[%s5703_s3 + $0x108] sm:$0xff] (!%p300_p3)   ;;  %v4508_v7 = vld [vmem:[%s5703_s3 + $0x110] sm:$0xff] (!%p300_p3)   ;;  %p374_p4 = scmp.lt.s32.totalorder (!%p300_p3), %s4613_s18, 1 }
   0x7   : > { %303 = sbr.rel (%p300_p3) target bundleno = 548 (0x224), region = 40  ;;  %v4680_v1 = vld [vmem:[%s5703_s3 + $0x140] sm:$0xff] (!%p300_p3)   ;;  %3749 = vmatprep.subr.bf16.mxu0 (!%p300_p3), %v4502_v0  ;;  %497 = vst [vmem:[#allocation2 + $0xe8] sm:$0xff] (!%p300_p3), %v4623_v3  ;;  %470 = vst [vmem:[#allocation2] sm:$0xff] (!%p300_p3), %v4623_v3  ;;  %v4693_v5 = vld [vmem:[%s5703_s3 + $0x148] sm:$0xff] (!%p300_p3)  }
   0x8   : > { %v4504_v2 = vld [vmem:[%s5703_s3 + $0xc0] sm:$0xff] (!%p300_p3)   ;;  %471 = vst [vmem:[#allocation2 + $0x18] sm:$0xff] (!%p300_p3), %v4623_v3  ;;  %472 = vst [vmem:[#allocation2 + $0x30] sm:$0xff] (!%p300_p3), %v4623_v3  ;;  %4301 = vmatprep.subr.bf16.mxu1 (!%p300_p3), %v4680_v1  ;;  %v4507_v6 = vld [vmem:[%s5703_s3 + $0xc8] sm:$0xff] (!%p300_p3)   ;;  %vm1043_vm0 = vsmask.f32 (!%p300_p3), 7424 }
   0x9   : > { %473 = vst [vmem:[#allocation2 + $0x48] sm:$0xff] (!%p300_p3), %v4623_v3  ;;  %474 = vst [vmem:[#allocation2 + $0x60] sm:$0xff] (!%p300_p3), %v4623_v3  ;;  %3750 = vmatpush3.bf16.msra.mxu0 (!%p300_p3), %v4504_v2  ;;  %4309 = vmatpush3.bf16.msra.mxu1 (!%p300_p3), %v4680_v1  ;;  %v4705_v8 = vld [vmem:[%s5703_s3 + $0x150] sm:$0xff] (!%p300_p3)   ;;  %v4511_v10 = vld [vmem:[%s5703_s3 + $0x118] sm:$0xff] (!%p300_p3)   ;;  %vm718_vm1 = vsmask.f32 (!%p300_p3), 256 }
   0xa   : > { %475 = vst [vmem:[#allocation2 + $0x78] sm:$0xff] (!%p300_p3), %v4623_v3  ;;  %476 = vst [vmem:[#allocation2 + $0x90] sm:$0xff] (!%p300_p3), %v4623_v3  ;;  %3751 = vmatprep.subr.bf16.mxu0 (!%p300_p3), %v4505_v4  ;;  %4302 = vmatprep.subr.bf16.mxu1 (!%p300_p3), %v4693_v5  ;;  %v4510_v9 = vld [vmem:[%s5703_s3 + $0xd0] sm:$0xff] (!%p300_p3)   ;;  %v4718_v11 = vld [vmem:[%s5703_s3 + $0x158] sm:$0xff] (!%p300_p3)  }
   0xb   : > { %477 = vst [vmem:[#allocation2 + $0xa8] sm:$0xff] (!%p300_p3), %v4623_v3  ;;  %478 = vst [vmem:[#allocation2 + $0xc0] sm:$0xff] (!%p300_p3), %v4623_v3  ;;  %v4513_v12 = vld [vmem:[%s5703_s3 + $0xd8] sm:$0xff] (!%p300_p3)   ;;  %v4514_v13 = vld [vmem:[%s5703_s3 + $0x120] sm:$0xff] (!%p300_p3)  }
   0xc   : > { %479 = vst [vmem:[#allocation2 + $0xd8] sm:$0xff] (!%p300_p3), %v4623_v3  ;;  %480 = vst [vmem:[#allocation2 + $0xf0] sm:$0xff] (!%p300_p3), %v4623_v3  ;;  %v4732_v14 = vld [vmem:[%s5703_s3 + $0x160] sm:$0xff] (!%p300_p3)   ;;  %v4517_v16 = vld [vmem:[%s5703_s3 + $0x128] sm:$0xff] (!%p300_p3)  }
   0xd   : > { %481 = vst [vmem:[#allocation2 + $0x108] sm:$0xff] (!%p300_p3), %v4623_v3  ;;  %482 = vst [vmem:[#allocation2 + $0x120] sm:$0xff] (!%p300_p3), %v4623_v3  ;;  %3752 = vmatpush3.bf16.msra.mxu0 (!%p300_p3), %v4507_v6  ;;  %4310 = vmatpush3.bf16.msra.mxu1 (!%p300_p3), %v4693_v5  ;;  %v4516_v15 = vld [vmem:[%s5703_s3 + $0xe0] sm:$0xff] (!%p300_p3)   ;;  %v4746_v17 = vld [vmem:[%s5703_s3 + $0x168] sm:$0xff] (!%p300_p3)  }
   0xe   : > { %483 = vst [vmem:[#allocation2 + $0x138] sm:$0xff] %v4623_v3  ;;  %484 = vst [vmem:[#allocation2 + $0x150] sm:$0xff] %v4623_v3  ;;  %3753 = vmatprep.subr.bf16.mxu0 %v4508_v7  ;;  %4303 = vmatprep.subr.bf16.mxu1 %v4705_v8  ;;  %s5711_s18 = smov (!%p374_p4, %s4613_s18), 1  ;;  %v4519_v18 = vld [vmem:[%s5703_s3 + $0xe8] sm:$0xff]   ;;  %v4520_v19 = vld [vmem:[%s5703_s3 + $0x130] sm:$0xff]  }
   0xf   : > { %485 = vst [vmem:[#allocation2 + $0x168] sm:$0xff] %v4623_v3  ;;  %486 = vst [vmem:[#allocation2 + $0x180] sm:$0xff] %v4623_v3  ;;  %s4748_s10 = sshll.u32 %s5711_s18, 7  ;;  %v4761_v20 = vld [vmem:[%s5703_s3 + $0x170] sm:$0xff]   ;;  %v4523_v22 = vld [vmem:[%s5703_s3 + $0x138] sm:$0xff]  }
  0x10   : > { %487 = vst [vmem:[#allocation2 + $0x198] sm:$0xff] %v4623_v3  ;;  %488 = vst [vmem:[#allocation2 + $0x10] sm:$0xff] %v4623_v3  ;;  %s4767_s22 = scalar_lea.vmem %s5700_s0, %s4748_s10  ;;  %v4522_v21 = vld [vmem:[%s5703_s3 + $0xf0] sm:$0xff]   ;;  %v4778_v23 = vld [vmem:[%s5703_s3 + $0x178] sm:$0xff]   ;;  %s396_s18 = scalar_lea.vmem %s5701_s1, %s4748_s10 }
  0x11   : > { %489 = vst [vmem:[#allocation2 + $0x28] sm:$0xff] %v4623_v3  ;;  %490 = vst [vmem:[#allocation2 + $0x40] sm:$0xff] %v4623_v3  ;;  %3754 = vmatpush3.bf16.msra.mxu0 %v4510_v9  ;;  %4311 = vmatpush3.bf16.msra.mxu1 %v4705_v8  ;;  %v4782_v24 = vld [vmem:[%s4767_s22] sm:$0xff]   ;;  %v4525_v26 = vld [vmem:[%s5703_s3 + $0xf8] sm:$0xff]   ;;  %s3619_s17 = sadd.s32 120, %s4748_s10  ;;  %s5605_s9 = scalar_lea.vmem %s5705_s5, %s4748_s10 }
  0x12   : > { %491 = vst [vmem:[#allocation2 + $0x58] sm:$0xff] %v4623_v3  ;;  %492 = vst [vmem:[#allocation2 + $0x70] sm:$0xff] %v4623_v3  ;;  %3755 = vmatprep.subr.bf16.mxu0 %v4511_v10  ;;  %4304 = vmatprep.subr.bf16.mxu1 %v4718_v11  ;;  %v4786_v25 = vld [vmem:[%s4767_s22 + $0x40] sm:$0xff]   ;;  %v1026_v27 = vld [vmem:[#allocation2 + $0xe8] sm:$0x1]  ;;  %v736_v34 = vshrl.u32 %v4782_v24, 16  ;;  %s413_s27 = scalar_lea.vmem %s5702_s2, %s3619_s17 }
  0x13   : > { %493 = vst [vmem:[#allocation2 + $0x88] sm:$0xff] %v4623_v3  ;;  %494 = vst [vmem:[#allocation2 + $0xa0] sm:$0xff] %v4623_v3  ;;  %1620 = vmatprep.mubr.bf16.mxu0 %v4782_v24  ;;  %v684_v28 = vld [vmem:[#allocation2 + $0x18] sm:$0x80]  ;;  %v1153_v29 = vshrl.u32 %v4786_v25, 16  ;;  %v1155_v30 = vshll.u32 %v4786_v25, 16 }
  0x14   : > { %495 = vst [vmem:[#allocation2 + $0xb8] sm:$0xff] %v4623_v3  ;;  %496 = vst [vmem:[#allocation2 + $0xd0] sm:$0xff] %v4623_v3  ;;  %v1160_v31 = vshll.u32 %v1026_v27, 16  ;;  %v4797_v32 = vld [vmem:[%s4767_s22 + $0x48] sm:$0xff]   ;;  %v732_v33 = vshrl.u32 %v684_v28, 16  ;;  %v739_v35 = vshll.u32 %v4782_v24, 16 }
  0x15   : > { %498 = vst [vmem:[#allocation2 + $0x100] sm:$0xff] %v4623_v3  ;;  %499 = vst [vmem:[#allocation2 + $0x118] sm:$0xff] %v4623_v3  ;;  %3756 = vmatpush3.bf16.msra.mxu0 %v4513_v12  ;;  %4312 = vmatpush3.bf16.msra.mxu1 %v4718_v11  ;;  %v4529_v36 = vld [vmem:[%s5703_s3 + $0x40] sm:$0xff]   ;;  %v1157_v37 = vrot.slane %v1155_v30, 1  ;;  %v738_v41 = vrot.slane %v736_v34, 7  ;;  %v1165_v42 = vshrl.u32 %v4797_v32, 16 }
  0x16   : > { %500 = vst [vmem:[#allocation2 + $0x130] sm:$0xff] %v4623_v3  ;;  %501 = vst [vmem:[#allocation2 + $0x148] sm:$0xff] %v4623_v3  ;;  %3757 = vmatprep.subr.bf16.mxu0 %v4514_v13  ;;  %4305 = vmatprep.subr.bf16.mxu1 %v4732_v14  ;;  %v1162_v38 = vrot.slane %v1160_v31, 1  ;;  %v734_v40 = vrot.slane %v732_v33, 7  ;;  %v1167_v43 = vshll.u32 %v4797_v32, 16  ;;  %v4530_v48 = vld [vmem:[%s5703_s3] sm:$0xff]  }
  0x17   : > { %502 = vst [vmem:[#allocation2 + $0x160] sm:$0xff] %v4623_v3  ;;  %503 = vst [vmem:[#allocation2 + $0x178] sm:$0xff] %v4623_v3  ;;  %v1158_v44 = vor.u32 %v1157_v37, %v1153_v29  ;;  %v741_v46 = vor.u32 %v739_v35, %v738_v41  ;;  %v4531_v51 = vld [vmem:[%s5703_s3 + $0x48] sm:$0xff]   ;;  %v834_v55 = vrot.slane %v1153_v29, 7  ;;  %v4833_v57 = vld [vmem:[%s4767_s22 + $0x50] sm:$0xff]   ;;  %v846_v60 = vrot.slane %v1165_v42, 7 }
  0x18   : > { %504 = vst [vmem:[#allocation2 + $0x190] sm:$0xff] %v4623_v3  ;;  %505 = vst [vmem:[#allocation2 + $0x1a8] sm:$0xff] %v4623_v3  ;;  %v1169_v47 = vrot.slane %v1167_v43, 1  ;;  %v4826_v54 = vld [vmem:[%s4767_s22 + $0x8] sm:$0xff]   ;;  %v686_v59 = vld [vmem:[#allocation2 + $0x30] sm:$0x80] }
  0x19   : > { %3758 = vmatpush3.bf16.msra.mxu0 %v4516_v15  ;;  %4313 = vmatpush3.bf16.msra.mxu1 %v4732_v14  ;;  %650 = vst [vmem:[#allocation2 + $0x20] sm:$0xff] %v4782_v24  ;;  %658 = vst [vmem:[#allocation2 + $0xe0] sm:$0xff] %v4786_v25  ;;  %v4814_v49 = vsel %vm1043_vm0, %v1158_v44, %v1162_v38  ;;  %v4822_v52 = vsel %vm718_vm1, %v734_v40, %v741_v46  ;;  %v744_v62 = vshrl.u32 %v686_v59, 16  ;;  %v4847_v4 = vld [vmem:[%s4767_s22 + $0x58] sm:$0xff]   ;;  %v4536_v15 = vld [vmem:[%s5703_s3 + $0x50] sm:$0xff]  }
  0x1a   : > { %3759 = vmatprep.subr.bf16.mxu0 %v4517_v16  ;;  %4306 = vmatprep.subr.bf16.mxu1 %v4746_v17  ;;  %659 = vst [vmem:[#allocation2 + $0xf8] sm:$0xff] %v4797_v32  ;;  %v1170_v53 = vor.u32 %v1169_v47, %v1165_v42  ;;  %651 = vst [vmem:[#allocation2 + $0x38] sm:$0xff] %v4826_v54  ;;  %v748_v63 = vshrl.u32 %v4826_v54, 16  ;;  %v751_v0 = vshll.u32 %v4826_v54, 16  ;;  %v1177_v2 = vshrl.u32 %v4833_v57, 16  ;;  %v4538_v31 = vld [vmem:[%s5703_s3 + $0x58] sm:$0xff]  }
  0x1b   : > { %4189 = vmatprep.mubr.bf16.mxu1 %v4814_v49  ;;  %660 = vst [vmem:[#allocation2 + $0x110] sm:$0xff] %v4833_v57  ;;  %v1179_v3 = vshll.u32 %v4833_v57, 16  ;;  %v4850_v6 = vor.u32 %v1155_v30, %v834_v55  ;;  %v4852_v7 = vor.u32 %v1167_v43, %v846_v60  ;;  %v746_v10 = vrot.slane %v744_v62, 7  ;;  %661 = vst [vmem:[#allocation2 + $0x128] sm:$0xff] %v4847_v4  ;;  %v4539_v35 = vld [vmem:[%s5703_s3 + $0x18] sm:$0xff]   ;;  %v4882_v37 = vld [vmem:[%s4767_s22 + $0x10] sm:$0xff]  }
  0x1c   : > { %v1028_v39 = vld [vmem:[#allocation2 + $0x100] sm:$0x1]  ;;  %v1030_v58 = vld [vmem:[#allocation2 + $0x118] sm:$0x1]  ;;  %v750_v12 = vrot.slane %v748_v63, 7  ;;  %v858_v33 = vrot.slane %v1177_v2, 7 }
  0x1d   : > { %3760 = vmatpush3.bf16.msra.mxu0 %v4519_v18  ;;  %4314 = vmatpush3.bf16.msra.mxu1 %v4746_v17  ;;  %v1172_v45 = vshll.u32 %v1028_v39, 16  ;;  %v1184_v61 = vshll.u32 %v1030_v58, 16  ;;  %v1032_v13 = vld [vmem:[#allocation2 + $0x130] sm:$0x1]  ;;  %v1181_v16 = vrot.slane %v1179_v3, 1  ;;  %v1189_v18 = vshrl.u32 %v4847_v4, 16 }
  0x1e   : > { %3761 = vmatprep.subr.bf16.mxu0 %v4520_v19  ;;  %4307 = vmatprep.subr.bf16.mxu1 %v4761_v20  ;;  %v1191_v19 = vshll.u32 %v4847_v4, 16  ;;  %v4885_v38 = vor.u32 %v1179_v3, %v858_v33  ;;  %v1073_v39 = vrot.slane %v751_v0, 1  ;;  %v4891_v41 = vld [vmem:[%s4767_s22 + $0x60] sm:$0xff]   ;;  %v1034_v42 = vld [vmem:[#allocation2 + $0x148] sm:$0x1]  ;;  %v760_v46 = vshrl.u32 %v4882_v37, 16 }
  0x1f   : > { %v1174_v50 = vrot.slane %v1172_v45, 1  ;;  %v1186_v9 = vrot.slane %v1184_v61, 1  ;;  %v1182_v27 = vor.u32 %v1181_v16, %v1177_v2  ;;  %v688_v43 = vld [vmem:[#allocation2 + $0x48] sm:$0x80]  ;;  %v763_v47 = vshll.u32 %v4882_v37, 16  ;;  %662 = vst [vmem:[#allocation2 + $0x140] sm:$0xff] %v4891_v41 }
  0x20   : > { %v1193_v28 = vrot.slane %v1191_v19, 1  ;;  %v756_v45 = vshrl.u32 %v688_v43, 16  ;;  %v4911_v55 = vor.u32 %v1073_v39, %v748_v63  ;;  %v762_v60 = vrot.slane %v760_v46, 7  ;;  %v1036_v61 = vld [vmem:[#allocation2 + $0x160] sm:$0x1] }
  0x21   : > { %3762 = vmatpush3.bf16.msra.mxu0 %v4522_v21  ;;  %4315 = vmatpush3.bf16.msra.mxu1 %v4761_v20  ;;  %v4829_v56 = vsel %vm1043_vm0, %v1170_v53, %v1174_v50  ;;  %v1196_v21 = vshll.u32 %v1032_v13, 16  ;;  %v1203_v50 = vshll.u32 %v4891_v41, 16  ;;  %v4543_v53 = vld [vmem:[%s5703_s3 + $0x60] sm:$0xff]   ;;  %v1220_v63 = vshll.u32 %v1036_v61, 16 }
  0x22   : > { %3763 = vmatprep.subr.bf16.mxu0 %v4523_v22  ;;  %4308 = vmatprep.subr.bf16.mxu1 %v4778_v23  ;;  %v4537_v22 = vld [vmem:[%s5703_s3 + $0x10] sm:$0xff]   ;;  %v1194_v34 = vor.u32 %v1193_v28, %v1189_v18  ;;  %v758_v59 = vrot.slane %v756_v45, 7  ;;  %v4544_v62 = vld [vmem:[%s5703_s3 + $0x20] sm:$0xff]   ;;  %v765_v3 = vor.u32 %v763_v47, %v762_v60 }
  0x23   : > { %v1198_v29 = vrot.slane %v1196_v21, 1  ;;  %v4945_v28 = vld [vmem:[%s4767_s22 + $0x70] sm:$0xff]  }
  0x24   : > { %v4922_v13 = vsel %vm718_vm1, %v758_v59, %v765_v3  ;;  %664 = vst [vmem:[#allocation2 + $0x170] sm:$0xff] %v4945_v28  ;;  %v1227_v43 = vshll.u32 %v4945_v28, 16  ;;  %v4550_v45 = vld [vmem:[%s5703_s3 + $0x70] sm:$0xff]   ;;  %v4552_v3 = vld [vmem:[%s5703_s3 + $0x78] sm:$0xff]  }
  0x25   : > { %3764 = vmatpush3.bf16.msra.mxu0 %v4525_v26  ;;  %4316 = vmatpush3.bf16.msra.mxu1 %v4778_v23  ;;  %v753_v26 = vor.u32 %v751_v0, %v750_v12  ;;  %v4888_v40 = vsel %vm1043_vm0, %v1194_v34, %v1198_v29  ;;  %v1205_v0 = vrot.slane %v1203_v50, 1  ;;  %v1222_v12 = vrot.slane %v1220_v63, 1  ;;  %v1038_v29 = vld [vmem:[#allocation2 + $0x178] sm:$0x1]  ;;  %v4551_v59 = vld [vmem:[%s5703_s3 + $0x30] sm:$0xff]  }
  0x26   : > { %4157 = vmatprep.subr.bf16.mxu0 %v4680_v1  ;;  %3885 = vmatprep.subr.bf16.mxu1 %v4529_v36  ;;  %v870_v36 = vrot.slane %v1189_v18, 7  ;;  %v1232_v34 = vshll.u32 %v1038_v29, 16  ;;  %v1229_v60 = vrot.slane %v1227_v43, 1 }
  0x27   : > { %v4868_v30 = vsel %vm718_vm1, %v746_v10, %v753_v26 }
  0x28   : > { %1621 = vmatmul.mubr.bf16.vlgmr.msra.gmra.mrb[0].mxu0 %v4822_v52  ;;  %4190 = vmatmul.mubr.bf16.vlgmr.msra.gmra.mrb[0].mxu1 %v4829_v56  ;;  %v4894_v44 = vor.u32 %v1191_v19, %v870_v36  ;;  %v4546_v19 = vld [vmem:[%s5703_s3 + $0x28] sm:$0xff]  }
  0x29   : > { %4158 = vmatpush3.bf16.msra.mxu0 %v4680_v1  ;;  %1628 = vmatprep.mubr.bf16.mxu0 %v4826_v54  ;;  %v4532_v1 = vld [vmem:[%s5703_s3 + $0x8] sm:$0xff]  }
  0x2a   : > { %3886 = vmatpush3.bf16.msra.mxu1 %v4530_v48  ;;  %4159 = vmatprep.subr.bf16.mxu0 %v4693_v5  ;;  %v1201_v48 = vshrl.u32 %v4891_v41, 16 }
  0x2b   : > { %3887 = vmatprep.subr.bf16.mxu1 %v4531_v51  ;;  %v4904_v51 = vld [vmem:[%s4767_s22 + $0x68] sm:$0xff]  }
  0x2c   : > { %663 = vst [vmem:[#allocation2 + $0x158] sm:$0xff] %v4904_v51  ;;  %v1215_v2 = vshll.u32 %v4904_v51, 16 }
  0x2d   : > { %4160 = vmatpush3.bf16.msra.mxu0 %v4693_v5  ;;  %v4874_v5 = vsel %vm1043_vm0, %v1182_v27, %v1186_v9  ;;  %v1206_v9 = vor.u32 %v1205_v0, %v1201_v48 }
  0x2e   : > { %4161 = vmatprep.subr.bf16.mxu0 %v4705_v8  ;;  %3888 = vmatpush3.bf16.msra.mxu1 %v4532_v1  ;;  %v1213_v1 = vshrl.u32 %v4904_v51, 16  ;;  %v1217_v10 = vrot.slane %v1215_v2, 1 }
  0x2f   : > { %3889 = vmatprep.subr.bf16.mxu1 %v4536_v15  ;;  %4193 = vmatprep.mubr.bf16.mxu1 %v4874_v5  ;;  %v882_v15 = vrot.slane %v1201_v48, 7  ;;  %v1234_v48 = vrot.slane %v1232_v34, 1 }
  0x30   : > { %1629 = vmatmul.mubr.bf16.gmra.mrb[4].mxu0 %v4868_v30  ;;  %4194 = vmatmul.mubr.bf16.gmra.mrb[4].mxu1 %v4888_v40  ;;  %v1218_v18 = vor.u32 %v1217_v10, %v1213_v1  ;;  %v894_v21 = vrot.slane %v1213_v1, 7 }
  0x31   : > { %4162 = vmatpush3.bf16.msra.mxu0 %v4705_v8  ;;  %v1208_v8 = vshll.u32 %v1034_v42, 16  ;;  %1636 = vmatprep.mubr.bf16.mxu0 %v4882_v37  ;;  %v4939_v26 = vor.u32 %v1203_v50, %v882_v15  ;;  %v1225_v42 = vshrl.u32 %v4945_v28, 16  ;;  %v4994_v15 = vld [vmem:[%s4767_s22 + $0x20] sm:$0xff]  }
  0x32   : > { %3890 = vmatpush3.bf16.msra.mxu1 %v4537_v22  ;;  %4163 = vmatprep.subr.bf16.mxu0 %v4718_v11  ;;  %v4937_v22 = vld [vmem:[%s4767_s22 + $0x18] sm:$0xff]   ;;  %v4942_v27 = vsel %vm1043_vm0, %v1218_v18, %v1222_v12  ;;  %v4948_v33 = vor.u32 %v1215_v2, %v894_v21  ;;  %v506_v18 = vld [vmem:[%s396_s18] sm:$0xf] }
  0x33   : > { %3891 = vmatprep.subr.bf16.mxu1 %v4538_v31  ;;  %v1210_v58 = vrot.slane %v1208_v8, 1  ;;  %v690_v31 = vld [vmem:[#allocation2 + $0x60] sm:$0x80]  ;;  %v772_v36 = vshrl.u32 %v4937_v22, 16  ;;  %v775_v39 = vshll.u32 %v4937_v22, 16  ;;  %v4958_v8 = vld [vmem:[%s4767_s22 + $0x78] sm:$0xff]   ;;  %v1230_v0 = vor.u32 %v1229_v60, %v1225_v42 }
  0x34   : > { %665 = vst [vmem:[#allocation2 + $0x188] sm:$0xff] %v4958_v8  ;;  %v1237_v61 = vshrl.u32 %v4958_v8, 16 }
  0x35   : > { %4164 = vmatpush3.bf16.msra.mxu0 %v4718_v11  ;;  %v4545_v11 = vld [vmem:[%s5703_s3 + $0x68] sm:$0xff]   ;;  %v4929_v16 = vsel %vm1043_vm0, %v1206_v9, %v1210_v58  ;;  %v1040_v58 = vld [vmem:[#allocation2 + $0x190] sm:$0x1]  ;;  %v906_v9 = vrot.slane %v1225_v42, 7  ;;  %v4986_v10 = vsel %vm1043_vm0, %v1230_v0, %v1234_v48  ;;  %v682_v42 = vld [vmem:[#allocation2] sm:$0x80] }
  0x36   : > { %3892 = vmatpush3.bf16.msra.mxu1 %v4539_v35  ;;  %4165 = vmatprep.subr.bf16.mxu0 %v4732_v14  ;;  %v768_v35 = vshrl.u32 %v690_v31, 16  ;;  %v512_v31 = vmul.bf16 0.0, %v506_v18  ;;  %v787_v48 = vshll.u32 %v4994_v15, 16  ;;  %v5034_v18 = vld [vmem:[%s4767_s22 + $0x38] sm:$0xff]  }
  0x37   : > { %3893 = vmatprep.subr.bf16.mxu1 %v4543_v53  ;;  %4197 = vmatprep.mubr.bf16.mxu1 %v4929_v16  ;;  %v774_v53 = vrot.slane %v772_v36, 7  ;;  %v4996_v21 = vor.u32 %v1227_v43, %v906_v9 }
  0x38   : > { %1637 = vmatmul.mubr.bf16.gmra.mrb[8].mxu0 %v4922_v13  ;;  %4198 = vmatmul.mubr.bf16.gmra.mrb[8].mxu1 %v4942_v27  ;;  %v770_v50 = vrot.slane %v768_v35, 7  ;;  %v692_v35 = vld [vmem:[#allocation2 + $0x78] sm:$0x80] }
  0x39   : > { %4166 = vmatpush3.bf16.msra.mxu0 %v4732_v14  ;;  %v1085_v14 = vrot.slane %v763_v47, 1  ;;  %1644 = vmatprep.mubr.bf16.mxu0 %v4937_v22  ;;  %v780_v43 = vshrl.u32 %v692_v35, 16  ;;  %v4558_v35 = vld [vmem:[%s5703_s3 + $0x88] sm:$0xff]  }
  0x3a   : > { %3894 = vmatpush3.bf16.msra.mxu1 %v4544_v62  ;;  %4167 = vmatprep.subr.bf16.mxu0 %v4746_v17  ;;  %v777_v62 = vor.u32 %v775_v39, %v774_v53  ;;  %v720_v53 = vshrl.u32 %v682_v42, 16 }
  0x3b   : > { %3895 = vmatprep.subr.bf16.mxu1 %v4545_v11  ;;  %v4964_v47 = vor.u32 %v1085_v14, %v760_v46  ;;  %v1244_v46 = vshll.u32 %v1040_v58, 16  ;;  %v918_v11 = vrot.slane %v1237_v61, 7  ;;  %4201 = vmatprep.mubr.bf16.mxu1 %v4986_v10  ;;  %v1097_v14 = vrot.slane %v775_v39, 1  ;;  %v4555_v58 = vld [vmem:[%s5703_s3 + $0x80] sm:$0xff]  }
  0x3c   : > { %v4979_v63 = vsel %vm718_vm1, %v770_v50, %v777_v62  ;;  %v784_v39 = vshrl.u32 %v4994_v15, 16  ;;  %v694_v62 = vld [vmem:[#allocation2 + $0x90] sm:$0x80]  ;;  %v722_v9 = vrot.slane %v720_v53, 7 }
  0x3d   : > { %4168 = vmatpush3.bf16.msra.mxu0 %v4746_v17  ;;  %v1239_v17 = vshll.u32 %v4958_v8, 16  ;;  %v1246_v2 = vrot.slane %v1244_v46, 1 }
  0x3e   : > { %3896 = vmatpush3.bf16.msra.mxu1 %v4546_v19  ;;  %4169 = vmatprep.subr.bf16.mxu0 %v4761_v20  ;;  %v507_v19 = vld [vmem:[%s396_s18 + $0x4] sm:$0xf]  ;;  %v786_v60 = vrot.slane %v784_v39, 7 }
  0x3f   : > { %3897 = vmatprep.subr.bf16.mxu1 %v4550_v45  ;;  %v1241_v1 = vrot.slane %v1239_v17, 1  ;;  %v513_v34 = vmul.bf16 0.0, %v507_v19  ;;  %v5002_v45 = vor.u32 %v1239_v17, %v918_v11 }
  0x40   : > { %1645 = vmatmul.mubr.bf16.gmra.mrb[12].mxu0 %v4979_v63  ;;  %v789_v0 = vor.u32 %v787_v48, %v786_v60 }
  0x41   : > { %4170 = vmatpush3.bf16.msra.mxu0 %v4761_v20  ;;  %v1242_v12 = vor.u32 %v1241_v1, %v1237_v61  ;;  %v4553_v20 = vld [vmem:[%s5703_s3 + $0x38] sm:$0xff]   ;;  %1652 = vmatprep.mubr.bf16.mxu0 %v4994_v15  ;;  %v5008_v50 = vcombine.low %v512_v31, %v513_v34  ;;  %v5018_v61 = vld [vmem:[%s4767_s22 + $0x28] sm:$0xff]   ;;  %v792_v1 = vshrl.u32 %v694_v62, 16 }
  0x42   : > { %3898 = vmatpush3.bf16.msra.mxu1 %v4551_v59  ;;  %4171 = vmatprep.subr.bf16.mxu0 %v4778_v23  ;;  %v782_v59 = vrot.slane %v780_v43, 7  ;;  %v696_v43 = vld [vmem:[#allocation2 + $0xa8] sm:$0x80] }
  0x43   : > { %3899 = vmatprep.subr.bf16.mxu1 %v4552_v3  ;;  %v4999_v29 = vsel %vm1043_vm0, %v1242_v12, %v1246_v2  ;;  %v724_v17 = vshrl.u32 %v5008_v50, 16  ;;  %v727_v46 = vshll.u32 %v5008_v50, 16  ;;  %v799_v2 = vshll.u32 %v5018_v61, 16  ;;  %v5026_v3 = vld [vmem:[%s4767_s22 + $0x30] sm:$0xff]  }
  0x44   : > { %4202 = vmatmul.mubr.bf16.gmra.mrb[12].mxu1 %v4999_v29  ;;  %v808_v34 = vshrl.u32 %v5026_v3, 16  ;;  %v811_v62 = vshll.u32 %v5026_v3, 16 }
  0x45   : > { %4172 = vmatpush3.bf16.msra.mxu0 %v4778_v23  ;;  %v5013_v23 = vor.u32 %v1097_v14, %v772_v36  ;;  %2086 = vmatprep.mubr.bf16.mxu1 %v5008_v50  ;;  %v796_v36 = vshrl.u32 %v5018_v61, 16  ;;  %v726_v12 = vrot.slane %v724_v17, 7  ;;  %v794_v14 = vrot.slane %v792_v1, 7  ;;  %v698_v1 = vld [vmem:[#allocation2 + $0xc0] sm:$0x80] }
  0x46   : > { %3900 = vmatpush3.bf16.msra.mxu1 %v4553_v20  ;;  %v5031_v20 = vsel %vm718_vm1, %v782_v59, %v789_v0  ;;  %v804_v59 = vshrl.u32 %v696_v43, 16  ;;  %v810_v60 = vrot.slane %v808_v34, 7  ;;  %v4560_v0 = vld [vmem:[%s5703_s3 + $0x90] sm:$0xff]  }
  0x47   : > { %4205 = vmatprep.subr.bf16.mxu1 %v4555_v58  ;;  %v798_v11 = vrot.slane %v796_v36, 7  ;;  %v729_v19 = vor.u32 %v727_v46, %v726_v12  ;;  %v4561_v12 = vld [vmem:[%s5703_s3 + $0x98] sm:$0xff]  }
  0x48   : > { %1653 = vmatmul.mubr.bf16.gmra.mrb[16].mxu0 %v5031_v20 }
  0x49   : > { %1660 = vmatprep.mubr.bf16.mxu0 %v5018_v61  ;;  %v801_v31 = vor.u32 %v799_v2, %v798_v11  ;;  %v730_v42 = vsel %vm718_vm1, %v722_v9, %v729_v19  ;;  %v820_v9 = vshrl.u32 %v5034_v18, 16  ;;  %v4564_v11 = vld [vmem:[%s5703_s3 + $0x1c0] sm:$0xff]   ;;  %v816_v19 = vshrl.u32 %v698_v1, 16 }
  0x4a   : > { %4021 = vmatprep.subr.bf16.mxu0 %v4564_v11  ;;  %v4575_v11 = vld [vmem:[%s5703_s3 + $0xb8] sm:$0xff]  }
  0x4b   : > { %v5047_v53 = vsel %vm718_vm1, %v794_v14, %v801_v31  ;;  %v823_v14 = vshll.u32 %v5034_v18, 16 }
  0x4c   : > { %2087 = vmatmul.mubr.bf16.vlgmr.msra.gmra.mrb[16].mxu1 %v730_v42  ;;  %v4562_v42 = vld [vmem:[%s5703_s3 + $0xa0] sm:$0xff]  }
  0x4d   : > { %4206 = vmatpush3.bf16.msra.mxu1 %v4555_v58  ;;  %2094 = vmatprep.mubr.bf16.mxu1 %v4782_v24  ;;  %v806_v58 = vrot.slane %v804_v59, 7  ;;  %v813_v24 = vor.u32 %v811_v62, %v810_v60  ;;  %v4563_v59 = vld [vmem:[%s5703_s3 + $0xa8] sm:$0xff]   ;;  %v1121_v60 = vrot.slane %v799_v2, 1  ;;  %v4566_v2 = vld [vmem:[%s5703_s3 + $0xb0] sm:$0xff]  }
  0x4e   : > { %4207 = vmatprep.subr.bf16.mxu1 %v4558_v35 }
  0x4f   : > { %v5066_v31 = vsel %vm718_vm1, %v806_v58, %v813_v24  ;;  %v5081_v58 = vor.u32 %v1121_v60, %v796_v36 }
  0x50   : > { %1661 = vmatmul.mubr.bf16.gmra.mrb[20].mxu0 %v5047_v53 }
  0x51   : > { %4208 = vmatpush3.bf16.msra.mxu1 %v4558_v35  ;;  %1668 = vmatprep.mubr.bf16.mxu0 %v5026_v3  ;;  %v822_v35 = vrot.slane %v820_v9, 7 }
  0x52   : > { %4209 = vmatprep.subr.bf16.mxu1 %v4560_v0 }
  0x53   : > { %v825_v43 = vor.u32 %v823_v14, %v822_v35  ;;  %v1145_v35 = vrot.slane %v823_v14, 1 }
  0x54   : > { %2095 = vmatmul.mubr.bf16.gmra.mrb[20].mxu1 %v4822_v52  ;;  %v1109_v52 = vrot.slane %v787_v48, 1 }
  0x55   : > { %2102 = vmatprep.mubr.bf16.mxu1 %v4826_v54  ;;  %4210 = vmatpush3.bf16.msra.mxu1 %v4560_v0  ;;  %v818_v54 = vrot.slane %v816_v19, 7  ;;  %v700_v0 = vld [vmem:[#allocation2 + $0xd8] sm:$0x80] }
  0x56   : > { %4211 = vmatprep.subr.bf16.mxu1 %v4561_v12  ;;  %v5078_v1 = vor.u32 %v1109_v52, %v784_v39  ;;  %v828_v24 = vshrl.u32 %v700_v0, 16  ;;  %v1133_v39 = vrot.slane %v811_v62, 1  ;;  %v1049_v62 = vrot.slane %v727_v46, 1  ;;  %v708_v0 = vld [vmem:[#allocation2 + $0x138] sm:$0x80] }
  0x57   : > { %v5085_v48 = vsel %vm718_vm1, %v818_v54, %v825_v43  ;;  %v5105_v54 = vor.u32 %v1145_v35, %v820_v9  ;;  %v704_v43 = vld [vmem:[#allocation2 + $0x108] sm:$0x80]  ;;  %v706_v9 = vld [vmem:[#allocation2 + $0x120] sm:$0x80] }
  0x58   : > { %1669 = vmatmul.mubr.bf16.gmra.mrb[24].mxu0 %v5066_v31  ;;  %v830_v36 = vrot.slane %v828_v24, 7  ;;  %v5095_v19 = vor.u32 %v1133_v39, %v808_v34  ;;  %v5109_v34 = vor.u32 %v1049_v62, %v724_v17  ;;  %v852_v17 = vshrl.u32 %v704_v43, 16  ;;  %v710_v39 = vld [vmem:[#allocation2 + $0x150] sm:$0x80] }
  0x59   : > { %4212 = vmatpush3.bf16.msra.mxu1 %v4561_v12  ;;  %1676 = vmatprep.mubr.bf16.mxu0 %v5034_v18  ;;  %v702_v12 = vld [vmem:[#allocation2 + $0xf0] sm:$0x80]  ;;  %v864_v60 = vshrl.u32 %v706_v9, 16 }
  0x5a   : > { %4213 = vmatprep.subr.bf16.mxu1 %v4562_v42  ;;  %v840_v52 = vshrl.u32 %v702_v12, 16  ;;  %v854_v46 = vrot.slane %v852_v17, 7  ;;  %v888_v12 = vshrl.u32 %v710_v39, 16  ;;  %v1010_v17 = vld [vmem:[#allocation2 + $0x28] sm:$0x1] }
  0x5b   : > { %v1014_v39 = vld [vmem:[#allocation2 + $0x58] sm:$0x1] }
  0x5c   : > { %2103 = vmatmul.mubr.bf16.gmra.mrb[24].mxu1 %v4868_v30  ;;  %v842_v14 = vrot.slane %v840_v52, 7  ;;  %v1009_v52 = vld [vmem:[#allocation2 + $0x20] sm:$0xff] }
  0x5d   : > { %2110 = vmatprep.mubr.bf16.mxu1 %v4882_v37  ;;  %4214 = vmatpush3.bf16.msra.mxu1 %v4562_v42  ;;  %v5103_v42 = vsel %vm718_vm1, %v830_v36, %v4850_v6  ;;  %v5116_v6 = vld [vmem:[%s5703_s3 + $0x200] sm:$0xff]   ;;  %v1059_v43 = vshll.u32 %v1009_v52, 16 }
  0x5e   : > { %4215 = vmatprep.subr.bf16.mxu1 %v4563_v59  ;;  %v5123_v50 = vsel %vm718_vm1, %v842_v14, %v4852_v7  ;;  %v866_v7 = vrot.slane %v864_v60, 7  ;;  %v714_v14 = vld [vmem:[#allocation2 + $0x180] sm:$0x80]  ;;  %v1064_v60 = vshll.u32 %v1010_v17, 16 }
  0x5f   : > { %v1061_v9 = vrot.slane %v1059_v43, 1 }
  0x60   : > { %1677 = vmatmul.mubr.bf16.gmra.mrb[28].mxu0 %v5085_v48  ;;  %v5139_v24 = vsel %vm718_vm1, %v866_v7, %v4894_v44  ;;  %v890_v44 = vrot.slane %v888_v12, 7 }
  0x61   : > { %4216 = vmatpush3.bf16.msra.mxu1 %v4563_v59  ;;  %1684 = vmatprep.mubr.bf16.mxu0 %v4786_v25  ;;  %v5131_v59 = vsel %vm718_vm1, %v854_v46, %v4885_v38  ;;  %v1057_v46 = vshrl.u32 %v1009_v52, 16  ;;  %v1018_v52 = vld [vmem:[#allocation2 + $0x88] sm:$0x1] }
  0x62   : > { %4217 = vmatprep.subr.bf16.mxu1 %v4566_v2  ;;  %v5155_v35 = vsel %vm718_vm1, %v890_v44, %v4948_v33  ;;  %v912_v33 = vshrl.u32 %v714_v14, 16  ;;  %v1088_v44 = vshll.u32 %v1014_v39, 16  ;;  %v4567_v14 = vld [vmem:[%s5703_s3 + $0x1c8] sm:$0xff]   ;;  %v1112_v17 = vshll.u32 %v1018_v52, 16 }
  0x63   : > { %v4576_v52 = vld [vmem:[%s5703_s3 + $0x1e8] sm:$0xff]  }
  0x64   : > { %2111 = vmatmul.mubr.bf16.gmra.mrb[28].mxu1 %v4922_v13  ;;  %v914_v7 = vrot.slane %v912_v33, 7  ;;  %v4569_v33 = vld [vmem:[%s5703_s3 + $0x1d0] sm:$0xff]  }
  0x65   : > { %2118 = vmatprep.mubr.bf16.mxu1 %v4937_v22  ;;  %4218 = vmatpush3.bf16.msra.mxu1 %v4566_v2  ;;  %v876_v2 = vshrl.u32 %v708_v0, 16  ;;  %v1062_v0 = vor.u32 %v1061_v9, %v1057_v46  ;;  %v1114_v46 = vrot.slane %v1112_v17, 1  ;;  %v1020_v9 = vld [vmem:[#allocation2 + $0xa0] sm:$0x1] }
  0x66   : > { %4219 = vmatprep.subr.bf16.mxu1 %v4575_v11 }
  0x67   : > { %v878_v38 = vrot.slane %v876_v2, 7  ;;  %v1066_v2 = vrot.slane %v1064_v60, 1 }
  0x68   : > { %1685 = vmatmul.mubr.bf16.gmra.mrb[32].mxu0 %v5103_v42 }
  0x69   : > { %4220 = vmatpush3.bf16.msra.mxu1 %v4575_v11  ;;  %1692 = vmatprep.mubr.bf16.mxu0 %v4797_v32  ;;  %v5147_v36 = vsel %vm718_vm1, %v878_v38, %v4939_v26  ;;  %v712_v11 = vld [vmem:[#allocation2 + $0x168] sm:$0x80]  ;;  %v1012_v38 = vld [vmem:[#allocation2 + $0x40] sm:$0x1]  ;;  %v5174_v12 = vsel %vm1043_vm0, %v1062_v0, %v1066_v2  ;;  %v1124_v0 = vshll.u32 %v1020_v9, 16  ;;  %v4571_v2 = vld [vmem:[%s5703_s3 + $0x1d8] sm:$0xff]  }
  0x6a   : > { %4253 = vmatprep.subr.bf16.mxu1 %v5116_v6  ;;  %v900_v62 = vshrl.u32 %v712_v11, 16  ;;  %v1090_v11 = vrot.slane %v1088_v44, 1 }
  0x6b   : > { %v1126_v39 = vrot.slane %v1124_v0, 1  ;;  %v4580_v0 = vld [vmem:[%s5703_s3 + $0x1f8] sm:$0xff]  }
  0x6c   : > { %2119 = vmatmul.mubr.bf16.gmra.mrb[32].mxu1 %v4979_v63  ;;  %v902_v26 = vrot.slane %v900_v62, 7  ;;  %v1016_v62 = vld [vmem:[#allocation2 + $0x70] sm:$0x1]  ;;  %v5192_v43 = vsel %vm1043_vm0, %v4964_v47, %v1090_v11  ;;  %v1022_v47 = vld [vmem:[#allocation2 + $0xb8] sm:$0x1]  ;;  %v4574_v11 = vld [vmem:[%s5703_s3 + $0x1a0] sm:$0xff]  }
  0x6d   : > { %2126 = vmatprep.mubr.bf16.mxu1 %v4994_v15 }
  0x70   : > { %1693 = vmatmul.mubr.bf16.gmra.mrb[36].mxu0 %v5123_v50 }
  0x71   : > { %1700 = vmatprep.mubr.bf16.mxu0 %v4833_v57 }
  0x74   : > { %2127 = vmatmul.mubr.bf16.gmra.mrb[36].mxu1 %v5031_v20 }
  0x75   : > { %2134 = vmatprep.mubr.bf16.mxu1 %v5018_v61 }
  0x78   : > { %1701 = vmatmul.mubr.bf16.gmra.mrb[40].mxu0 %v5131_v59 }
  0x79   : > { %1708 = vmatprep.mubr.bf16.mxu0 %v4847_v4 }
  0x7c   : > { %2135 = vmatmul.mubr.bf16.gmra.mrb[40].mxu1 %v5047_v53 }
  0x7d   : > { %2142 = vmatprep.mubr.bf16.mxu1 %v5026_v3 }
  0x80   : > { %1709 = vmatmul.mubr.bf16.gmra.mrb[44].mxu0 %v5139_v24 }
  0x81   : > { %1716 = vmatprep.mubr.bf16.mxu0 %v4891_v41 }
  0x84   : > { %2143 = vmatmul.mubr.bf16.gmra.mrb[44].mxu1 %v5066_v31 }
  0x85   : > { %2150 = vmatprep.mubr.bf16.mxu1 %v5034_v18 }
  0x88   : > { %1717 = vmatmul.mubr.bf16.gmra.mrb[48].mxu0 %v5147_v36 }
  0x89   : > { %1724 = vmatprep.mubr.bf16.mxu0 %v4904_v51 }
  0x8c   : > { %2151 = vmatmul.mubr.bf16.gmra.mrb[48].mxu1 %v5085_v48 }
  0x8d   : > { %2158 = vmatprep.mubr.bf16.mxu1 %v4786_v25  ;;  %v5163_v25 = vsel %vm718_vm1, %v902_v26, %v4996_v21  ;;  %v1076_v21 = vshll.u32 %v1012_v38, 16  ;;  %v1100_v26 = vshll.u32 %v1016_v62, 16  ;;  %v5216_v38 = vsel %vm1043_vm0, %v5078_v1, %v1114_v46  ;;  %v1024_v1 = vld [vmem:[#allocation2 + $0xd0] sm:$0x1] }
  0x8e   : > { %v1148_v62 = vshll.u32 %v1024_v1, 16  ;;  %v4592_v1 = vld [vmem:[#allocation2 + $0xf8] sm:$0xff] }
  0x90   : > { %1725 = vmatmul.mubr.bf16.gmra.mrb[52].mxu0 %v5155_v35 }
  0x91   : > { %1732 = vmatprep.mubr.bf16.mxu0 %v4945_v28 }
  0x94   : > { %2159 = vmatmul.mubr.bf16.gmra.mrb[52].mxu1 %v5103_v42 }
  0x95   : > { %2166 = vmatprep.mubr.bf16.mxu1 %v4797_v32  ;;  %v5171_v32 = vsel %vm718_vm1, %v914_v7, %v5002_v45  ;;  %v4565_v45 = vld [vmem:[%s5703_s3 + $0x180] sm:$0xff]   ;;  %v4570_v7 = vld [vmem:[%s5703_s3 + $0x190] sm:$0xff]  }
  0x98   : > { %1733 = vmatmul.mubr.bf16.gmra.mrb[56].mxu0 %v5163_v25 }
  0x99   : > { %1740 = vmatprep.mubr.bf16.mxu0 %v4958_v8  ;;  %v1078_v8 = vrot.slane %v1076_v21, 1  ;;  %v4573_v21 = vld [vmem:[%s5703_s3 + $0x1e0] sm:$0xff]  }
  0x9c   : > { %2167 = vmatmul.mubr.bf16.gmra.mrb[56].mxu1 %v5123_v50 }
  0x9d   : > { %2174 = vmatprep.mubr.bf16.mxu1 %v4833_v57  ;;  %v5182_v57 = vsel %vm1043_vm0, %v4911_v55, %v1078_v8  ;;  %v1102_v55 = vrot.slane %v1100_v26, 1  ;;  %v5230_v8 = vsel %vm1043_vm0, %v5081_v58, %v1126_v39  ;;  %v666_v58 = vld [vmem:[%s413_s27] sm:$0xf]  ;;  %v667_v26 = vld [vmem:[%s413_s27 + $0x4] sm:$0xf] }
  0x9e   : > { %v673_v17 = vmul.bf16 0.0, %v667_v26 }
  0x9f   : > { %v5206_v60 = vsel %vm1043_vm0, %v5013_v23, %v1102_v55  ;;  %v4572_v23 = vld [vmem:[%s5703_s3 + $0x198] sm:$0xff]  }
  0xa0   : > { %1741 = vmatmul.mubr.bf16.gmra.mrb[60].mxu0 %v5171_v32 }
  0xa1   : > { %4173 = vmatprep.mubr.bf16.mxu0 %v5174_v12 }
  0xa4   : > { %2175 = vmatmul.mubr.bf16.gmra.mrb[60].mxu1 %v5131_v59 }
  0xa5   : > { %2182 = vmatprep.mubr.bf16.mxu1 %v4847_v4  ;;  %v4568_v4 = vld [vmem:[%s5703_s3 + $0x188] sm:$0xff]  }
  0xa8   : > { %4174 = vmatmul.mubr.bf16.vlgmr.msra.gmra.mrb[64].mxu0 %v5182_v57 }
  0xa9   : > { %4022 = vmatpush3.bf16.msra.mxu0 %v4565_v45  ;;  %4177 = vmatprep.mubr.bf16.mxu0 %v5192_v43 }
  0xaa   : > { %4023 = vmatprep.subr.bf16.mxu0 %v4567_v14  ;;  %v672_v14 = vmul.bf16 0.0, %v666_v58 }
  0xac   : > { %2183 = vmatmul.mubr.bf16.gmra.mrb[64].mxu1 %v5139_v24  ;;  %v5254_v46 = vcombine.low %v672_v14, %v673_v17 }
  0xad   : > { %2190 = vmatprep.mubr.bf16.mxu1 %v4891_v41  ;;  %4024 = vmatpush3.bf16.msra.mxu0 %v4568_v4  ;;  %v1136_v41 = vshll.u32 %v1022_v47, 16  ;;  %v4577_v4 = vld [vmem:[%s5703_s3 + $0x1a8] sm:$0xff]   ;;  %v4579_v47 = vld [vmem:[%s5703_s3 + $0x1b0] sm:$0xff]  }
  0xae   : > { %4025 = vmatprep.subr.bf16.mxu0 %v4569_v33  ;;  %v4578_v33 = vld [vmem:[%s5703_s3 + $0x1f0] sm:$0xff]  }
  0xaf   : > { %v1138_v44 = vrot.slane %v1136_v41, 1  ;;  %v4583_v41 = vld [vmem:[%s5703_s3 + $0x208] sm:$0xff]  }
  0xb0   : > { %4178 = vmatmul.mubr.bf16.gmra.mrb[68].mxu0 %v5206_v60 }
  0xb1   : > { %4026 = vmatpush3.bf16.msra.mxu0 %v4570_v7  ;;  %4181 = vmatprep.mubr.bf16.mxu0 %v5216_v38  ;;  %v5241_v45 = vsel %vm1043_vm0, %v5095_v19, %v1138_v44  ;;  %v1150_v19 = vrot.slane %v1148_v62, 1 }
  0xb2   : > { %4027 = vmatprep.subr.bf16.mxu0 %v4571_v2  ;;  %v4590_v2 = vld [vmem:[#allocation2 + $0x38] sm:$0xff] }
  0xb3   : > { %v5260_v9 = vsel %vm1043_vm0, %v5105_v54, %v1150_v19 }
  0xb4   : > { %2191 = vmatmul.mubr.bf16.gmra.mrb[68].mxu1 %v5147_v36 }
  0xb5   : > { %2198 = vmatprep.mubr.bf16.mxu1 %v4904_v51  ;;  %4028 = vmatpush3.bf16.msra.mxu0 %v4572_v23  ;;  %v1008_v51 = vld [vmem:[#allocation2 + $0x10] sm:$0x1] }
  0xb6   : > { %4029 = vmatprep.subr.bf16.mxu0 %v4573_v21  ;;  %v1052_v55 = vshll.u32 %v1008_v51, 16  ;;  %v4593_v51 = vld [vmem:[#allocation2 + $0x110] sm:$0xff] }
  0xb8   : > { %4182 = vmatmul.mubr.bf16.gmra.mrb[72].mxu0 %v5230_v8  ;;  %v1054_v7 = vrot.slane %v1052_v55, 1 }
  0xb9   : > { %4030 = vmatpush3.bf16.msra.mxu0 %v4574_v11  ;;  %4185 = vmatprep.mubr.bf16.mxu0 %v5241_v45 }
  0xba   : > { %4031 = vmatprep.subr.bf16.mxu0 %v4576_v52  ;;  %v1055_v54 = vsel %vm1043_vm0, %v5109_v34, %v1054_v7  ;;  %v4584_v34 = vld [vmem:[%s5703_s3 + $0x210] sm:$0xff]  }
  0xbc   : > { %2199 = vmatmul.mubr.bf16.gmra.mrb[72].mxu1 %v5155_v35 }
  0xbd   : > { %2206 = vmatprep.mubr.bf16.mxu1 %v4945_v28  ;;  %4032 = vmatpush3.bf16.msra.mxu0 %v4577_v4  ;;  %v4581_v28 = vld [vmem:[%s5703_s3 + $0x1b8] sm:$0xff]  }
  0xbe   : > { %4033 = vmatprep.subr.bf16.mxu0 %v4578_v33 }
  0xc0   : > { %4186 = vmatmul.mubr.bf16.gmra.mrb[76].mxu0 %v5260_v9 }
  0xc1   : > { %4034 = vmatpush3.bf16.msra.mxu0 %v4579_v47  ;;  %2649 = vmatprep.mubr.bf16.mxu0 %v4590_v2 }
  0xc2   : > { %4035 = vmatprep.subr.bf16.mxu0 %v4580_v0 }
  0xc4   : > { %2207 = vmatmul.mubr.bf16.gmra.mrb[76].mxu1 %v5163_v25 }
  0xc5   : > { %4221 = vmatprep.mubr.bf16.mxu1 %v1055_v54  ;;  %4036 = vmatpush3.bf16.msra.mxu0 %v4581_v28  ;;  %v4596_v54 = vld [vmem:[#allocation2 + $0x158] sm:$0xff] }
  0xc8   : > { %2650 = vmatmul.mubr.bf16.vlgmr.msra.gmra.mrb[80].mxu0 %v4868_v30  ;;  %v4585_v30 = vld [vmem:[%s5703_s3 + $0x218] sm:$0xff]  }
  0xc9   : > { %2657 = vmatprep.mubr.bf16.mxu0 %v4882_v37  ;;  %v4586_v37 = vld [vmem:[%s5703_s3 + $0x220] sm:$0xff]  }
  0xcc   : > { %4222 = vmatmul.mubr.bf16.vlgmr.msra.gmra.mrb[80].mxu1 %v5174_v12  ;;  %v4591_v12 = vld [vmem:[#allocation2 + $0xe0] sm:$0xff] }
  0xcd   : > { %4254 = vmatpush3.bf16.msra.mxu1 %v5116_v6  ;;  %4225 = vmatprep.mubr.bf16.mxu1 %v5182_v57 }
  0xce   : > { %4255 = vmatprep.subr.bf16.mxu1 %v4583_v41 }
  0xd0   : > { %2658 = vmatmul.mubr.bf16.gmra.mrb[84].mxu0 %v4922_v13  ;;  %v4587_v13 = vld [vmem:[%s5703_s3 + $0x228] sm:$0xff]  }
  0xd1   : > { %4256 = vmatpush3.bf16.msra.mxu1 %v4583_v41  ;;  %2665 = vmatprep.mubr.bf16.mxu0 %v4937_v22  ;;  %v4588_v22 = vld [vmem:[%s5703_s3 + $0x230] sm:$0xff]  }
  0xd2   : > { %4257 = vmatprep.subr.bf16.mxu1 %v4584_v34 }
  0xd4   : > { %4226 = vmatmul.mubr.bf16.gmra.mrb[84].mxu1 %v5192_v43 }
  0xd5   : > { %4229 = vmatprep.mubr.bf16.mxu1 %v5206_v60  ;;  %4258 = vmatpush3.bf16.msra.mxu1 %v4584_v34 }
  0xd6   : > { %4259 = vmatprep.subr.bf16.mxu1 %v4585_v30 }
  0xd8   : > { %2666 = vmatmul.mubr.bf16.gmra.mrb[88].mxu0 %v4979_v63  ;;  %v4589_v63 = vld [vmem:[%s5703_s3 + $0x238] sm:$0xff]  }
  0xd9   : > { %4260 = vmatpush3.bf16.msra.mxu1 %v4585_v30  ;;  %2673 = vmatprep.mubr.bf16.mxu0 %v4994_v15 }
  0xda   : > { %4261 = vmatprep.subr.bf16.mxu1 %v4586_v37 }
  0xdc   : > { %4230 = vmatmul.mubr.bf16.gmra.mrb[88].mxu1 %v5216_v38 }
  0xdd   : > { %4233 = vmatprep.mubr.bf16.mxu1 %v5230_v8  ;;  %4262 = vmatpush3.bf16.msra.mxu1 %v4586_v37 }
  0xde   : > { %4263 = vmatprep.subr.bf16.mxu1 %v4587_v13 }
  0xe0   : > { %2674 = vmatmul.mubr.bf16.gmra.mrb[92].mxu0 %v5031_v20 }
  0xe1   : > { %4264 = vmatpush3.bf16.msra.mxu1 %v4587_v13  ;;  %2681 = vmatprep.mubr.bf16.mxu0 %v5018_v61 }
  0xe2   : > { %4265 = vmatprep.subr.bf16.mxu1 %v4588_v22 }
  0xe4   : > { %4234 = vmatmul.mubr.bf16.gmra.mrb[92].mxu1 %v5241_v45 }
  0xe5   : > { %4237 = vmatprep.mubr.bf16.mxu1 %v5260_v9  ;;  %4266 = vmatpush3.bf16.msra.mxu1 %v4588_v22 }
  0xe6   : > { %4267 = vmatprep.subr.bf16.mxu1 %v4589_v63 }
  0xe8   : > { %2682 = vmatmul.mubr.bf16.gmra.mrb[96].mxu0 %v5047_v53 }
  0xe9   : > { %4268 = vmatpush3.bf16.msra.mxu1 %v4589_v63  ;;  %2689 = vmatprep.mubr.bf16.mxu0 %v5026_v3 }
  0xec   : > { %4238 = vmatmul.mubr.bf16.gmra.mrb[0].mxu1 %v4814_v49 }
  0xed   : > { %4241 = vmatprep.mubr.bf16.mxu1 %v4829_v56 }
  0xf0   : > { %2690 = vmatmul.mubr.bf16.gmra.mrb[100].mxu0 %v5066_v31 }
  0xf1   : > { %2697 = vmatprep.mubr.bf16.mxu0 %v5034_v18 }
  0xf4   : > { %4242 = vmatmul.mubr.bf16.gmra.mrb[4].mxu1 %v4874_v5 }
  0xf5   : > { %4245 = vmatprep.mubr.bf16.mxu1 %v4888_v40 }
  0xf8   : > { %2698 = vmatmul.mubr.bf16.gmra.mrb[104].mxu0 %v5085_v48 }
  0xf9   : > { %2705 = vmatprep.mubr.bf16.mxu0 %v4591_v12 }
  0xfb   : > { %v3765_v15 = vpop.f32.mrb[0].mxu0 }
  0xfc   : > { %v3766_v61 = vpop.f32.mrb[1].mxu0  ;;  %4246 = vmatmul.mubr.bf16.gmra.mrb[8].mxu1 %v4929_v16 }
  0xfd   : > { %v5321_v20 = vadd.f32 %v3766_v61, %v3765_v15  ;;  %v3768_v53 = vpop.f32.mrb[2].mxu0  ;;  %4249 = vmatprep.mubr.bf16.mxu1 %v4942_v27  ;;  %v4597_v61 = vld [vmem:[#allocation2 + $0x170] sm:$0xff] }
  0xfe   : > { %v3769_v6 = vpop.f32.mrb[3].mxu0 }
  0xff   : > { %v5324_v3 = vadd.f32 %v3769_v6, %v3768_v53 }
 0x100   : > { %2706 = vmatmul.mubr.bf16.gmra.mrb[108].mxu0 %v5103_v42 }
 0x101   : > { %2713 = vmatprep.mubr.bf16.mxu0 %v4592_v1 }
 0x103   : > { %v3771_v18 = vpop.f32.mrb[4].mxu0 }
 0x104   : > { %v3772_v31 = vpop.f32.mrb[5].mxu0  ;;  %4250 = vmatmul.mubr.bf16.gmra.mrb[12].mxu1 %v4986_v10 }
 0x105   : > { %v5328_v23 = vadd.f32 %v3772_v31, %v3771_v18  ;;  %v3774_v39 = vpop.f32.mrb[6].mxu0  ;;  %4269 = vmatprep.mubr.bf16.mxu1 %v5182_v57  ;;  %v4594_v57 = vld [vmem:[#allocation2 + $0x128] sm:$0xff] }
 0x106   : > { %v3775_v21 = vpop.f32.mrb[7].mxu0 }
 0x107   : > { %v5331_v44 = vadd.f32 %v3775_v21, %v3774_v39 }
 0x108   : > { %2714 = vmatmul.mubr.bf16.gmra.mrb[112].mxu0 %v5123_v50 }
 0x109   : > { %2721 = vmatprep.mubr.bf16.mxu0 %v4593_v51 }
 0x10b   : > { %v3777_v48 = vpop.f32.mrb[8].mxu0 }
 0x10c   : > { %v3778_v11 = vpop.f32.mrb[9].mxu0  ;;  %4270 = vmatmul.mubr.bf16.vlgmr.msra.gmra.mrb[80].mxu1 %v5192_v43  ;;  %v4595_v43 = vld [vmem:[#allocation2 + $0x140] sm:$0xff] }
 0x10d   : > { %v5336_v62 = vadd.f32 %v3778_v11, %v3777_v48  ;;  %v3780_v52 = vpop.f32.mrb[10].mxu0  ;;  %4273 = vmatprep.mubr.bf16.mxu1 %v5206_v60  ;;  %v4598_v11 = vld [vmem:[#allocation2 + $0x188] sm:$0xff] }
 0x10e   : > { %v3781_v58 = vpop.f32.mrb[11].mxu0 }
 0x10f   : > { %v5339_v42 = vadd.f32 %v3781_v58, %v3780_v52 }
 0x110   : > { %2722 = vmatmul.mubr.bf16.gmra.mrb[116].mxu0 %v5131_v59 }
 0x111   : > { %2729 = vmatprep.mubr.bf16.mxu0 %v4594_v57 }
 0x113   : > { %v3783_v26 = vpop.f32.mrb[12].mxu0 }
 0x114   : > { %v3784_v14 = vpop.f32.mrb[13].mxu0  ;;  %4274 = vmatmul.mubr.bf16.gmra.mrb[84].mxu1 %v5216_v38 }
 0x115   : > { %v5344_v50 = vadd.f32 %v3784_v14, %v3783_v26  ;;  %v3786_v17 = vpop.f32.mrb[14].mxu0  ;;  %4277 = vmatprep.mubr.bf16.mxu1 %v5230_v8  ;;  %v931_v26 = vshll.u32 %v5254_v46, 16 }
 0x116   : > { %v3787_v4 = vpop.f32.mrb[15].mxu0 }
 0x117   : > { %v5347_v19 = vadd.f32 %v3787_v4, %v3786_v17  ;;  %v1042_v4 = vld [vmem:[#allocation2 + $0x1a8] sm:$0x1] }
 0x118   : > { %2730 = vmatmul.mubr.bf16.gmra.mrb[120].mxu0 %v5139_v24 }
 0x119   : > { %2737 = vmatprep.mubr.bf16.mxu0 %v4595_v43 }
 0x11b   : > { %v3789_v59 = vpop.f32.mrb[16].mxu0 }
 0x11c   : > { %4278 = vmatmul.mubr.bf16.gmra.mrb[88].mxu1 %v5241_v45  ;;  %v3790_v60 = vpop.f32.mrb[17].mxu0 }
 0x11d   : > { %4281 = vmatprep.mubr.bf16.mxu1 %v5260_v9  ;;  %v5352_v55 = vadd.f32 %v3790_v60, %v3789_v59  ;;  %v3792_v38 = vpop.f32.mrb[18].mxu0 }
 0x11e   : > { %v3793_v47 = vpop.f32.mrb[19].mxu0 }
 0x11f   : > { %v3901_v33 = vpop.f32.mrb[16].mxu1  ;;  %v5354_v7 = vadd.f32 %v3793_v47, %v3792_v38  ;;  %v1253_v47 = vrot.slane %v931_v26, 1 }
 0x120   : > { %v3902_v8 = vpop.f32.mrb[17].mxu1  ;;  %2738 = vmatmul.mubr.bf16.gmra.mrb[124].mxu0 %v5147_v36 }
 0x121   : > { %v5356_v0 = vadd.f32 %v3902_v8, %v3901_v33  ;;  %v3904_v28 = vpop.f32.mrb[18].mxu1  ;;  %2745 = vmatprep.mubr.bf16.mxu0 %v4596_v54 }
 0x122   : > { %v3905_v24 = vpop.f32.mrb[19].mxu1 }
 0x123   : > { %v5359_v45 = vadd.f32 %v3905_v24, %v3904_v28  ;;  %v3795_v9 = vpop.f32.mrb[20].mxu0 }
 0x124   : > { %4282 = vmatmul.mubr.bf16.gmra.mrb[92].mxu1 %v4814_v49  ;;  %v3796_v2 = vpop.f32.mrb[21].mxu0 }
 0x125   : > { %4285 = vmatprep.mubr.bf16.mxu1 %v4829_v56  ;;  %v5363_v41 = vadd.f32 %v3796_v2, %v3795_v9  ;;  %v3798_v34 = vpop.f32.mrb[22].mxu0 }
 0x126   : > { %v3799_v37 = vpop.f32.mrb[23].mxu0 }
 0x127   : > { %v3907_v30 = vpop.f32.mrb[20].mxu1  ;;  %v5365_v13 = vadd.f32 %v3799_v37, %v3798_v34 }
 0x128   : > { %v3908_v22 = vpop.f32.mrb[21].mxu1  ;;  %2746 = vmatmul.mubr.bf16.gmra.mrb[128].mxu0 %v5155_v35 }
 0x129   : > { %v5367_v36 = vadd.f32 %v3908_v22, %v3907_v30  ;;  %v3910_v63 = vpop.f32.mrb[22].mxu1  ;;  %2753 = vmatprep.mubr.bf16.mxu0 %v4597_v61 }
 0x12a   : > { %v3911_v15 = vpop.f32.mrb[23].mxu1 }
 0x12b   : > { %v5370_v49 = vadd.f32 %v3911_v15, %v3910_v63  ;;  %v3801_v56 = vpop.f32.mrb[24].mxu0 }
 0x12c   : > { %4286 = vmatmul.mubr.bf16.gmra.mrb[0].mxu1 %v4874_v5  ;;  %v3802_v53 = vpop.f32.mrb[25].mxu0  ;;  %v928_v5 = vshrl.u32 %v5254_v46, 16 }
 0x12d   : > { %4289 = vmatprep.mubr.bf16.mxu1 %v4888_v40  ;;  %v5374_v6 = vadd.f32 %v3802_v53, %v3801_v56  ;;  %v3804_v12 = vpop.f32.mrb[26].mxu0  ;;  %v716_v40 = vld [vmem:[#allocation2 + $0x198] sm:$0x80] }
 0x12e   : > { %v3805_v31 = vpop.f32.mrb[27].mxu0  ;;  %v930_v17 = vrot.slane %v928_v5, 7  ;;  %v1254_v34 = vor.u32 %v1253_v47, %v928_v5 }
 0x12f   : > { %v3913_v18 = vpop.f32.mrb[24].mxu1  ;;  %v5376_v39 = vadd.f32 %v3805_v31, %v3804_v12 }
 0x130   : > { %v3914_v21 = vpop.f32.mrb[25].mxu1  ;;  %2754 = vmatmul.mubr.bf16.gmra.mrb[132].mxu0 %v5163_v25  ;;  %v924_v25 = vshrl.u32 %v716_v40, 16  ;;  %v933_v24 = vor.u32 %v931_v26, %v930_v17 }
 0x131   : > { %v5378_v35 = vadd.f32 %v3914_v21, %v3913_v18  ;;  %v3916_v1 = vpop.f32.mrb[26].mxu1  ;;  %2761 = vmatprep.mubr.bf16.mxu0 %v4598_v11 }
 0x132   : > { %v3917_v48 = vpop.f32.mrb[27].mxu1  ;;  %v926_v28 = vrot.slane %v924_v25, 7 }
 0x133   : > { %v5382_v52 = vadd.f32 %v3917_v48, %v3916_v1  ;;  %v3807_v51 = vpop.f32.mrb[28].mxu0 }
 0x134   : > { %4290 = vmatmul.mubr.bf16.gmra.mrb[4].mxu1 %v4929_v16  ;;  %v3808_v58 = vpop.f32.mrb[29].mxu0 }
 0x135   : > { %4293 = vmatprep.mubr.bf16.mxu1 %v4942_v27  ;;  %v5387_v57 = vadd.f32 %v3808_v58, %v3807_v51  ;;  %v3810_v14 = vpop.f32.mrb[30].mxu0  ;;  %v1256_v27 = vshll.u32 %v1042_v4, 16 }
 0x136   : > { %v3811_v59 = vpop.f32.mrb[31].mxu0 }
 0x137   : > { %v3919_v43 = vpop.f32.mrb[28].mxu1  ;;  %v5389_v60 = vadd.f32 %v3811_v59, %v3810_v14  ;;  %v1258_v30 = vrot.slane %v1256_v27, 1 }
 0x138   : > { %v3920_v38 = vpop.f32.mrb[29].mxu1  ;;  %2762 = vmatmul.mubr.bf16.gmra.mrb[136].mxu0 %v5171_v32  ;;  %v934_v32 = vsel %vm718_vm1, %v926_v28, %v933_v24 }
 0x139   : > { %v5391_v33 = vadd.f32 %v3920_v38, %v3919_v43  ;;  %v3922_v16 = vpop.f32.mrb[30].mxu1  ;;  %2769 = vmatprep.mubr.bf16.mxu0 %v5254_v46 }
 0x13a   : > { %v3923_v8 = vpop.f32.mrb[31].mxu1 }
 0x13b   : > { %v5395_v54 = vadd.f32 %v3923_v8, %v3922_v16  ;;  %v3813_v9 = vpop.f32.mrb[32].mxu0 }
 0x13c   : > { %4294 = vmatmul.mubr.bf16.gmra.mrb[8].mxu1 %v4986_v10  ;;  %v3814_v2 = vpop.f32.mrb[33].mxu0  ;;  %v1259_v10 = vsel %vm1043_vm0, %v1254_v34, %v1258_v30 }
 0x13d   : > { %4297 = vmatprep.mubr.bf16.mxu1 %v4999_v29  ;;  %v3815_v37 = vadd.f32 %v3814_v2, %v3813_v9  ;;  %v3816_v22 = vpop.f32.mrb[34].mxu0 }
 0x13e   : > { %v3817_v15 = vpop.f32.mrb[35].mxu0 }
 0x13f   : > { %v3925_v63 = vpop.f32.mrb[32].mxu1  ;;  %v3818_v61 = vadd.f32 %v3817_v15, %v3816_v22 }
 0x140   : > { %v3926_v46 = vpop.f32.mrb[33].mxu1  ;;  %2770 = vmatmul.mubr.bf16.gmra.mrb[140].mxu0 %v934_v32 }
 0x141   : > { %v5400_v56 = vadd.f32 %v3926_v46, %v3925_v63  ;;  %v3928_v53 = vpop.f32.mrb[34].mxu1 }
 0x142   : > { %v3929_v12 = vpop.f32.mrb[35].mxu1 }
 0x143   : > { %v5403_v18 = vadd.f32 %v3929_v12, %v3928_v53  ;;  %v3819_v29 = vpop.f32.mrb[36].mxu0 }
 0x144   : > { %4298 = vmatmul.mubr.bf16.gmra.mrb[12].mxu1 %v1259_v10  ;;  %v3820_v31 = vpop.f32.mrb[37].mxu0 }
 0x145   : > { %v3821_v21 = vadd.f32 %v3820_v31, %v3819_v29  ;;  %v3822_v1 = vpop.f32.mrb[38].mxu0 }
 0x146   : > { %v3823_v11 = vpop.f32.mrb[39].mxu0 }
 0x147   : > { %v3931_v48 = vpop.f32.mrb[36].mxu1  ;;  %v3824_v5 = vadd.f32 %v3823_v11, %v3822_v1 }
 0x148   : > { %v3932_v40 = vpop.f32.mrb[37].mxu1 }
 0x149   : > { %v5405_v51 = vadd.f32 %v3932_v40, %v3931_v48  ;;  %v3934_v58 = vpop.f32.mrb[38].mxu1 }
 0x14a   : > { %v3935_v26 = vpop.f32.mrb[39].mxu1 }
 0x14b   : > { %v5407_v14 = vadd.f32 %v3935_v26, %v3934_v58  ;;  %v3825_v25 = vpop.f32.mrb[40].mxu0 }
 0x14c   : > { %v3826_v17 = vpop.f32.mrb[41].mxu0 }
 0x14d   : > { %v3827_v4 = vadd.f32 %v3826_v17, %v3825_v25  ;;  %v3828_v43 = vpop.f32.mrb[42].mxu0 }
 0x14e   : > { %v3829_v38 = vpop.f32.mrb[43].mxu0 }
 0x14f   : > { %v3937_v59 = vpop.f32.mrb[40].mxu1  ;;  %v3830_v16 = vadd.f32 %v3829_v38, %v3828_v43 }
 0x150   : > { %v3938_v47 = vpop.f32.mrb[41].mxu1 }
 0x151   : > { %v5409_v27 = vadd.f32 %v3938_v47, %v3937_v59  ;;  %v3940_v8 = vpop.f32.mrb[42].mxu1 }
 0x152   : > { %v3941_v28 = vpop.f32.mrb[43].mxu1 }
 0x153   : > { %v5411_v24 = vadd.f32 %v3941_v28, %v3940_v8  ;;  %v3831_v9 = vpop.f32.mrb[44].mxu0 }
 0x154   : > { %v3832_v2 = vpop.f32.mrb[45].mxu0 }
 0x155   : > { %v5413_v34 = vadd.f32 %v3832_v2, %v3831_v9  ;;  %v3834_v30 = vpop.f32.mrb[46].mxu0 }
 0x156   : > { %v3835_v32 = vpop.f32.mrb[47].mxu0 }
 0x157   : > { %v3943_v22 = vpop.f32.mrb[44].mxu1  ;;  %v3836_v63 = vadd.f32 %v3835_v32, %v3834_v30 }
 0x158   : > { %v3944_v15 = vpop.f32.mrb[45].mxu1 }
 0x159   : > { %v5415_v46 = vadd.f32 %v3944_v15, %v3943_v22  ;;  %v3946_v53 = vpop.f32.mrb[46].mxu1 }
 0x15a   : > { %v3947_v10 = vpop.f32.mrb[47].mxu1 }
 0x15b   : > { %v5417_v12 = vadd.f32 %v3947_v10, %v3946_v53  ;;  %v3837_v29 = vpop.f32.mrb[48].mxu0 }
 0x15c   : > { %v3838_v31 = vpop.f32.mrb[49].mxu0 }
 0x15d   : > { %v5419_v1 = vadd.f32 %v3838_v31, %v3837_v29  ;;  %v3840_v48 = vpop.f32.mrb[50].mxu0 }
 0x15e   : > { %v3841_v40 = vpop.f32.mrb[51].mxu0 }
 0x15f   : > { %v3949_v11 = vpop.f32.mrb[48].mxu1  ;;  %v5421_v26 = vadd.f32 %v3841_v40, %v3840_v48 }
 0x160   : > { %v3950_v58 = vpop.f32.mrb[49].mxu1 }
 0x161   : > { %v3951_v25 = vadd.f32 %v3950_v58, %v3949_v11  ;;  %v3952_v17 = vpop.f32.mrb[50].mxu1 }
 0x162   : > { %v3953_v43 = vpop.f32.mrb[51].mxu1 }
 0x163   : > { %v5423_v59 = vadd.f32 %v3951_v25, %v3815_v37  ;;  %v3954_v38 = vadd.f32 %v3953_v43, %v3952_v17  ;;  %v3843_v47 = vpop.f32.mrb[52].mxu0 }
 0x164   : > { %v3844_v28 = vpop.f32.mrb[53].mxu0 }
 0x165   : > { %v5425_v8 = vadd.f32 %v3954_v38, %v3818_v61  ;;  %v5427_v9 = vadd.f32 %v3844_v28, %v3843_v47  ;;  %v3846_v2 = vpop.f32.mrb[54].mxu0 }
 0x166   : > { %v3847_v22 = vpop.f32.mrb[55].mxu0 }
 0x167   : > { %v3955_v30 = vpop.f32.mrb[52].mxu1  ;;  %v5429_v15 = vadd.f32 %v3847_v22, %v3846_v2 }
 0x168   : > { %v3956_v32 = vpop.f32.mrb[53].mxu1 }
 0x169   : > { %v3957_v53 = vadd.f32 %v3956_v32, %v3955_v30  ;;  %v3958_v10 = vpop.f32.mrb[54].mxu1 }
 0x16a   : > { %v3959_v29 = vpop.f32.mrb[55].mxu1 }
 0x16b   : > { %v5431_v31 = vadd.f32 %v3957_v53, %v3821_v21  ;;  %v3960_v37 = vadd.f32 %v3959_v29, %v3958_v10  ;;  %v3849_v48 = vpop.f32.mrb[56].mxu0 }
 0x16c   : > { %v3850_v61 = vpop.f32.mrb[57].mxu0 }
 0x16d   : > { %v5433_v11 = vadd.f32 %v3960_v37, %v3824_v5  ;;  %v5435_v40 = vadd.f32 %v3850_v61, %v3849_v48  ;;  %v3852_v58 = vpop.f32.mrb[58].mxu0 }
 0x16e   : > { %v3853_v17 = vpop.f32.mrb[59].mxu0 }
 0x16f   : > { %v3961_v25 = vpop.f32.mrb[56].mxu1  ;;  %v5437_v38 = vadd.f32 %v3853_v17, %v3852_v58 }
 0x170   : > { %v3962_v43 = vpop.f32.mrb[57].mxu1 }
 0x171   : > { %v3963_v47 = vadd.f32 %v3962_v43, %v3961_v25  ;;  %v3964_v28 = vpop.f32.mrb[58].mxu1 }
 0x172   : > { %v3965_v2 = vpop.f32.mrb[59].mxu1 }
 0x173   : > { %v5439_v30 = vadd.f32 %v3963_v47, %v3827_v4  ;;  %v3966_v21 = vadd.f32 %v3965_v2, %v3964_v28  ;;  %v3855_v22 = vpop.f32.mrb[60].mxu0 }
 0x174   : > { %v3856_v5 = vpop.f32.mrb[61].mxu0 }
 0x175   : > { %v5441_v32 = vadd.f32 %v3966_v21, %v3830_v16  ;;  %v5443_v53 = vadd.f32 %v3856_v5, %v3855_v22  ;;  %v3858_v10 = vpop.f32.mrb[62].mxu0 }
 0x176   : > { %v3859_v37 = vpop.f32.mrb[63].mxu0 }
 0x177   : > { %v3967_v29 = vpop.f32.mrb[60].mxu1  ;;  %v5445_v61 = vadd.f32 %v3859_v37, %v3858_v10 }
 0x178   : > { %v3968_v48 = vpop.f32.mrb[61].mxu1 }
 0x179   : > { %v3969_v58 = vadd.f32 %v3968_v48, %v3967_v29  ;;  %v3970_v17 = vpop.f32.mrb[62].mxu1 }
 0x17a   : > { %v3971_v25 = vpop.f32.mrb[63].mxu1 }
 0x17b   : > { %v5448_v43 = vadd.f32 %v3969_v58, %v5413_v34  ;;  %v3972_v4 = vadd.f32 %v3971_v25, %v3970_v17  ;;  %v4175_v47 = vpop.f32.mrb[64].mxu0 }
 0x17c   : > { %v1792_v16 = vadd.f32 %v4175_v47, %v5328_v23  ;;  %v1783_v2 = vpop.f32.mrb[65].mxu0 }
 0x17d   : > { %v5450_v28 = vadd.f32 %v3972_v4, %v3836_v63  ;;  %v1784_v21 = vadd.f32 %v5321_v20, %v1783_v2  ;;  %v4176_v22 = vpop.f32.mrb[66].mxu0 }
 0x17e   : > { %v5455_v5 = vadd.f32 %v5367_v36, %v1792_v16  ;;  %v1795_v29 = vadd.f32 %v4176_v22, %v5331_v44  ;;  %v1786_v37 = vpop.f32.mrb[67].mxu0 }
 0x17f   : > { %v3973_v10 = vpop.f32.mrb[64].mxu1  ;;  %v5459_v34 = vadd.f32 %v5356_v0, %v1784_v21  ;;  %v1787_v63 = vadd.f32 %v5324_v3, %v1786_v37 }
 0x180   : > { %v3974_v48 = vpop.f32.mrb[65].mxu1  ;;  %v5463_v23 = vadd.f32 %v5370_v49, %v1795_v29 }
 0x181   : > { %v3975_v58 = vadd.f32 %v3974_v48, %v3973_v10  ;;  %v3976_v17 = vpop.f32.mrb[66].mxu1  ;;  %v5466_v20 = vadd.f32 %v5359_v45, %v1787_v63 }
 0x182   : > { %v3977_v36 = vpop.f32.mrb[67].mxu1 }
 0x183   : > { %v5469_v25 = vadd.f32 %v3975_v58, %v5419_v1  ;;  %v3978_v44 = vadd.f32 %v3977_v36, %v3976_v17  ;;  %v4179_v4 = vpop.f32.mrb[68].mxu0 }
 0x184   : > { %v1808_v47 = vadd.f32 %v4179_v4, %v5344_v50  ;;  %v1799_v3 = vpop.f32.mrb[69].mxu0 }
 0x185   : > { %v5472_v0 = vadd.f32 %v3978_v44, %v5421_v26  ;;  %v1800_v16 = vadd.f32 %v5336_v62, %v1799_v3  ;;  %v4180_v49 = vpop.f32.mrb[70].mxu0 }
 0x186   : > { %v5477_v2 = vadd.f32 %v5391_v33, %v1808_v47  ;;  %v1811_v21 = vadd.f32 %v4180_v49, %v5347_v19  ;;  %v1802_v22 = vpop.f32.mrb[71].mxu0 }
 0x187   : > { %v3979_v45 = vpop.f32.mrb[68].mxu1  ;;  %v5481_v1 = vadd.f32 %v5378_v35, %v1800_v16  ;;  %v1803_v26 = vadd.f32 %v5339_v42, %v1802_v22 }
 0x188   : > { %v3980_v10 = vpop.f32.mrb[69].mxu1  ;;  %v5485_v50 = vadd.f32 %v5395_v54, %v1811_v21 }
 0x189   : > { %v3981_v29 = vadd.f32 %v3980_v10, %v3979_v45  ;;  %v3982_v37 = vpop.f32.mrb[70].mxu1  ;;  %v5488_v62 = vadd.f32 %v5382_v52, %v1803_v26 }
 0x18a   : > { %v3983_v33 = vpop.f32.mrb[71].mxu1 }
 0x18b   : > { %v5491_v48 = vadd.f32 %v3981_v29, %v5427_v9  ;;  %v3984_v19 = vadd.f32 %v3983_v33, %v3982_v37  ;;  %v4183_v63 = vpop.f32.mrb[72].mxu0 }
 0x18c   : > { %v1824_v58 = vadd.f32 %v4183_v63, %v5363_v41  ;;  %v1815_v42 = vpop.f32.mrb[73].mxu0 }
 0x18d   : > { %v5494_v35 = vadd.f32 %v3984_v19, %v5429_v15  ;;  %v1816_v17 = vadd.f32 %v5352_v55, %v1815_v42  ;;  %v4184_v54 = vpop.f32.mrb[74].mxu0 }
 0x18e   : > { %v5499_v36 = vadd.f32 %v5405_v51, %v1824_v58  ;;  %v1827_v44 = vadd.f32 %v4184_v54, %v5365_v13  ;;  %v1818_v4 = vpop.f32.mrb[75].mxu0 }
 0x18f   : > { %v3985_v52 = vpop.f32.mrb[72].mxu1  ;;  %v5503_v9 = vadd.f32 %v5400_v56, %v1816_v17  ;;  %v1819_v15 = vadd.f32 %v5354_v7, %v1818_v4 }
 0x190   : > { %v3986_v47 = vpop.f32.mrb[73].mxu1  ;;  %v5507_v41 = vadd.f32 %v5407_v14, %v1827_v44 }
 0x191   : > { %v3987_v3 = vadd.f32 %v3986_v47, %v3985_v52  ;;  %v3988_v16 = vpop.f32.mrb[74].mxu1  ;;  %v5510_v55 = vadd.f32 %v5403_v18, %v1819_v15 }
 0x192   : > { %v3989_v51 = vpop.f32.mrb[75].mxu1 }
 0x193   : > { %v5513_v49 = vadd.f32 %v3987_v3, %v5435_v40  ;;  %v3990_v13 = vadd.f32 %v3989_v51, %v3988_v16  ;;  %v4187_v45 = vpop.f32.mrb[76].mxu0 }
 0x194   : > { %v1840_v21 = vadd.f32 %v4187_v45, %v5387_v57  ;;  %v1831_v7 = vpop.f32.mrb[77].mxu0 }
 0x195   : > { %v5516_v56 = vadd.f32 %v3990_v13, %v5437_v38  ;;  %v1832_v22 = vadd.f32 %v5374_v6, %v1831_v7  ;;  %v4188_v14 = vpop.f32.mrb[78].mxu0 }
 0x196   : > { %v5521_v10 = vadd.f32 %v5415_v46, %v1840_v21  ;;  %v1843_v26 = vadd.f32 %v4188_v14, %v5389_v60  ;;  %v1834_v29 = vpop.f32.mrb[79].mxu0 }
 0x197   : > { %v3991_v18 = vpop.f32.mrb[76].mxu1  ;;  %v5525_v40 = vadd.f32 %v5409_v27, %v1832_v22  ;;  %v1835_v38 = vadd.f32 %v5376_v39, %v1834_v29 }
 0x198   : > { %v3992_v37 = vpop.f32.mrb[77].mxu1  ;;  %v5529_v57 = vadd.f32 %v5417_v12, %v1843_v26 }
 0x199   : > { %v3993_v33 = vadd.f32 %v3992_v37, %v3991_v18  ;;  %v3994_v19 = vpop.f32.mrb[78].mxu1  ;;  %v2140_v6 = vadd.f32 %v5411_v24, %v1835_v38 }
 0x19a   : > { %v3995_v63 = vpop.f32.mrb[79].mxu1 }
 0x19b   : > { %v5533_v46 = vadd.f32 %v3993_v33, %v5443_v53  ;;  %v3996_v58 = vadd.f32 %v3995_v63, %v3994_v19  ;;  %v4037_v60 = vpop.f32.mrb[80].mxu0 }
 0x19c   : > { %v4038_v27 = vpop.f32.mrb[81].mxu0 }
 0x19d   : > { %v5536_v42 = vadd.f32 %v3996_v58, %v5445_v61  ;;  %v4039_v17 = vadd.f32 %v4038_v27, %v4037_v60  ;;  %v4040_v54 = vpop.f32.mrb[82].mxu0 }
 0x19e   : > { %v4041_v39 = vpop.f32.mrb[83].mxu0 }
 0x19f   : > { %v4042_v52 = vadd.f32 %v4041_v39, %v4040_v54  ;;  %v5539_v12 = vadd.f32 %v4039_v17, %v5459_v34 }
 0x1a1   : > { %v5542_v44 = vadd.f32 %v4042_v52, %v5466_v20 }
 0x1a3   : > { %v4043_v24 = vpop.f32.mrb[84].mxu0 }
 0x1a4   : > { %v4044_v4 = vpop.f32.mrb[85].mxu0 }
 0x1a5   : > { %v4045_v53 = vadd.f32 %v4044_v4, %v4043_v24  ;;  %v4046_v47 = vpop.f32.mrb[86].mxu0 }
 0x1a6   : > { %v4047_v15 = vpop.f32.mrb[87].mxu0 }
 0x1a7   : > { %v4048_v3 = vadd.f32 %v4047_v15, %v4046_v47  ;;  %v4319_v61 = vadd.f32 %v4045_v53, %v5455_v5 }
 0x1a9   : > { %v5546_v16 = vadd.f32 %v4048_v3, %v5463_v23 }
 0x1ab   : > { %v4049_v51 = vpop.f32.mrb[88].mxu0 }
 0x1ac   : > { %v4050_v13 = vpop.f32.mrb[89].mxu0 }
 0x1ad   : > { %v4051_v45 = vadd.f32 %v4050_v13, %v4049_v51  ;;  %v4052_v21 = vpop.f32.mrb[90].mxu0 }
 0x1ae   : > { %v4053_v34 = vpop.f32.mrb[91].mxu0 }
 0x1af   : > { %v4054_v7 = vadd.f32 %v4053_v34, %v4052_v21  ;;  %v5549_v20 = vadd.f32 %v4051_v45, %v5481_v1 }
 0x1b1   : > { %v5552_v22 = vadd.f32 %v4054_v7, %v5488_v62 }
 0x1b3   : > { %v4055_v14 = vpop.f32.mrb[92].mxu0 }
 0x1b4   : > { %v4056_v18 = vpop.f32.mrb[93].mxu0 }
 0x1b5   : > { %v4057_v26 = vadd.f32 %v4056_v18, %v4055_v14  ;;  %v4058_v29 = vpop.f32.mrb[94].mxu0 }
 0x1b6   : > { %v4059_v5 = vpop.f32.mrb[95].mxu0 }
 0x1b7   : > { %v4060_v37 = vadd.f32 %v4059_v5, %v4058_v29  ;;  %v5555_v23 = vadd.f32 %v4057_v26, %v5477_v2 }
 0x1b9   : > { %v5558_v38 = vadd.f32 %v4060_v37, %v5485_v50 }
 0x1bb   : > { %v4061_v33 = vpop.f32.mrb[96].mxu0 }
 0x1bc   : > { %v4062_v19 = vpop.f32.mrb[97].mxu0 }
 0x1bd   : > { %v4063_v63 = vadd.f32 %v4062_v19, %v4061_v33  ;;  %v4064_v1 = vpop.f32.mrb[98].mxu0 }
 0x1be   : > { %v4065_v58 = vpop.f32.mrb[99].mxu0 }
 0x1bf   : > { %v4066_v60 = vadd.f32 %v4065_v58, %v4064_v1  ;;  %v5561_v62 = vadd.f32 %v4063_v63, %v5503_v9 }
 0x1c1   : > { %v5564_v27 = vadd.f32 %v4066_v60, %v5510_v55 }
 0x1c3   : > { %v4067_v17 = vpop.f32.mrb[100].mxu0 }
 0x1c4   : > { %v4068_v54 = vpop.f32.mrb[101].mxu0 }
 0x1c5   : > { %v4069_v39 = vadd.f32 %v4068_v54, %v4067_v17  ;;  %v4070_v2 = vpop.f32.mrb[102].mxu0 }
 0x1c6   : > { %v4071_v52 = vpop.f32.mrb[103].mxu0 }
 0x1c7   : > { %v4072_v24 = vadd.f32 %v4071_v52, %v4070_v2  ;;  %v5567_v50 = vadd.f32 %v4069_v39, %v5499_v36 }
 0x1c9   : > { %v5570_v4 = vadd.f32 %v4072_v24, %v5507_v41 }
 0x1cb   : > { %v4073_v53 = vpop.f32.mrb[104].mxu0 }
 0x1cc   : > { %v4074_v47 = vpop.f32.mrb[105].mxu0 }
 0x1cd   : > { %v4075_v15 = vadd.f32 %v4074_v47, %v4073_v53  ;;  %v4076_v9 = vpop.f32.mrb[106].mxu0 }
 0x1ce   : > { %v4077_v3 = vpop.f32.mrb[107].mxu0 }
 0x1cf   : > { %v4078_v51 = vadd.f32 %v4077_v3, %v4076_v9  ;;  %v5573_v55 = vadd.f32 %v4075_v15, %v5525_v40 }
 0x1d1   : > { %v5575_v13 = vadd.f32 %v4078_v51, %v2140_v6  ;;  %v5586_v6 = vld [vmem:[%s5704_s4] ss:$0 sm:$0xff] }
 0x1d3   : > { %v4079_v45 = vpop.f32.mrb[108].mxu0 }
 0x1d4   : > { %v4080_v21 = vpop.f32.mrb[109].mxu0 }
 0x1d5   : > { %v4081_v34 = vadd.f32 %v4080_v21, %v4079_v45  ;;  %v4082_v7 = vpop.f32.mrb[110].mxu0 }
 0x1d6   : > { %v4083_v36 = vpop.f32.mrb[111].mxu0 }
 0x1d7   : > { %v4084_v14 = vadd.f32 %v4083_v36, %v4082_v7  ;;  %v5578_v41 = vadd.f32 %v4081_v34, %v5521_v10 }
 0x1d9   : > { %v5581_v18 = vadd.f32 %v4084_v14, %v5529_v57 }
 0x1db   : > { %v4085_v26 = vpop.f32.mrb[112].mxu0 }
 0x1dc   : > { %v4086_v29 = vpop.f32.mrb[113].mxu0 }
 0x1dd   : > { %v4087_v5 = vadd.f32 %v4086_v29, %v4085_v26  ;;  %v4088_v37 = vpop.f32.mrb[114].mxu0 }
 0x1de   : > { %v4089_v33 = vpop.f32.mrb[115].mxu0 }
 0x1df   : > { %v4271_v40 = vpop.f32.mrb[80].mxu1  ;;  %v4090_v1 = vadd.f32 %v4089_v33, %v4088_v37  ;;  %v5589_v10 = vadd.f32 %v5423_v59, %v4087_v5 }
 0x1e0   : > { %v4320_v19 = vadd.f32 %v4319_v61, %v4271_v40  ;;  %v2812_v63 = vpop.f32.mrb[81].mxu1 }
 0x1e1   : > { %v4324_v57 = vadd.f32 %v5539_v12, %v2812_v63  ;;  %v4272_v58 = vpop.f32.mrb[82].mxu1  ;;  %v5595_v39 = vadd.f32 %v5425_v8, %v4090_v1 }
 0x1e2   : > { %v2980_v60 = vadd.f32 %v4320_v19, %v5586_v6  ;;  %v4328_v17 = vadd.f32 %v5546_v16, %v4272_v58  ;;  %v2815_v54 = vpop.f32.mrb[83].mxu1 }
 0x1e3   : > { %v2978_v2 = vadd.f32 %v4324_v57, %v5586_v6  ;;  %v4332_v61 = vadd.f32 %v5542_v44, %v2815_v54  ;;  %v4091_v59 = vpop.f32.mrb[116].mxu0 }
 0x1e4   : > { %v2981_v52 = vadd.f32 %v4328_v17, %v5586_v6  ;;  %v4092_v12 = vpop.f32.mrb[117].mxu0  ;;  %v3012_v53 = vmax.f32 %v2980_v60, 0.0 }
 0x1e5   : > { %v2979_v24 = vadd.f32 %v4332_v61, %v5586_v6  ;;  %v4093_v15 = vadd.f32 %v4092_v12, %v4091_v59  ;;  %v4094_v9 = vpop.f32.mrb[118].mxu0  ;;  %v3010_v3 = vmax.f32 %v2978_v2, 0.0 }
 0x1e6   : > { %v3013_v47 = vmax.f32 %v2981_v52, 0.0  ;;  %v4095_v16 = vpop.f32.mrb[119].mxu0 }
 0x1e7   : > { %v3011_v8 = vmax.f32 %v2979_v24, 0.0  ;;  %v4275_v44 = vpop.f32.mrb[84].mxu1  ;;  %v4096_v34 = vadd.f32 %v4095_v16, %v4094_v9  ;;  %v5609_v7 = vadd.f32 %v5431_v31, %v4093_v15 }
 0x1e8   : > { %v3661_v51 = vpack.c.bf16 %v3013_v47, %v3012_v53  ;;  %v4336_v45 = vadd.f32 %v5555_v23, %v4275_v44  ;;  %v2828_v21 = vpop.f32.mrb[85].mxu1 }
 0x1e9   : > { %v3656_v36 = vpack.c.bf16 %v3011_v8, %v3010_v3  ;;  %v4340_v14 = vadd.f32 %v5549_v20, %v2828_v21  ;;  %v4276_v26 = vpop.f32.mrb[86].mxu1  ;;  %v5616_v40 = vadd.f32 %v5433_v11, %v4096_v34 }
 0x1ea   : > { %3734 = vst [vmem:[%s5605_s9 + $0x8] sm:$0xff] %v3661_v51   ;;  %v2984_v29 = vadd.f32 %v4336_v45, %v5586_v6  ;;  %v4344_v5 = vadd.f32 %v5558_v38, %v4276_v26  ;;  %v2831_v37 = vpop.f32.mrb[87].mxu1 }
 0x1eb   : > { %3657 = vst [vmem:[%s5605_s9] sm:$0xff] %v3656_v36   ;;  %v2982_v23 = vadd.f32 %v4340_v14, %v5586_v6  ;;  %v4348_v33 = vadd.f32 %v5552_v22, %v2831_v37  ;;  %v4097_v19 = vpop.f32.mrb[120].mxu0 }
 0x1ec   : > { %v2985_v31 = vadd.f32 %v4344_v5, %v5586_v6  ;;  %v4098_v63 = vpop.f32.mrb[121].mxu0  ;;  %v3016_v1 = vmax.f32 %v2984_v29, 0.0 }
 0x1ed   : > { %v2983_v20 = vadd.f32 %v4348_v33, %v5586_v6  ;;  %v4099_v58 = vadd.f32 %v4098_v63, %v4097_v19  ;;  %v4100_v38 = vpop.f32.mrb[122].mxu0  ;;  %v3014_v60 = vmax.f32 %v2982_v23, 0.0 }
 0x1ee   : > { %v3017_v57 = vmax.f32 %v2985_v31, 0.0  ;;  %v4101_v54 = vpop.f32.mrb[123].mxu0 }
 0x1ef   : > { %v3015_v17 = vmax.f32 %v2983_v20, 0.0  ;;  %v4279_v11 = vpop.f32.mrb[88].mxu1  ;;  %v4102_v52 = vadd.f32 %v4101_v54, %v4100_v38  ;;  %v5625_v59 = vadd.f32 %v5439_v30, %v4099_v58 }
 0x1f0   : > { %v3671_v2 = vpack.c.bf16 %v3017_v57, %v3016_v1  ;;  %v4352_v61 = vadd.f32 %v5567_v50, %v4279_v11  ;;  %v2844_v22 = vpop.f32.mrb[89].mxu1 }
 0x1f1   : > { %v3666_v24 = vpack.c.bf16 %v3015_v17, %v3014_v60  ;;  %v4356_v12 = vadd.f32 %v5561_v62, %v2844_v22  ;;  %v4280_v53 = vpop.f32.mrb[90].mxu1  ;;  %v5632_v3 = vadd.f32 %v5441_v32, %v4102_v52 }
 0x1f2   : > { %3736 = vst [vmem:[%s5605_s9 + $0x18] sm:$0xff] %v3671_v2   ;;  %v2988_v47 = vadd.f32 %v4352_v61, %v5586_v6  ;;  %v4360_v15 = vadd.f32 %v5570_v4, %v4280_v53  ;;  %v2847_v9 = vpop.f32.mrb[91].mxu1 }
 0x1f3   : > { %3735 = vst [vmem:[%s5605_s9 + $0x10] sm:$0xff] %v3666_v24   ;;  %v2986_v50 = vadd.f32 %v4356_v12, %v5586_v6  ;;  %v4364_v8 = vadd.f32 %v5564_v27, %v2847_v9  ;;  %v4103_v44 = vpop.f32.mrb[124].mxu0 }
 0x1f4   : > { %v2989_v30 = vadd.f32 %v4360_v15, %v5586_v6  ;;  %v4104_v16 = vpop.f32.mrb[125].mxu0  ;;  %v3020_v51 = vmax.f32 %v2988_v47, 0.0 }
 0x1f5   : > { %v2987_v62 = vadd.f32 %v4364_v8, %v5586_v6  ;;  %v4105_v21 = vadd.f32 %v4104_v16, %v4103_v44  ;;  %v4106_v4 = vpop.f32.mrb[126].mxu0  ;;  %v3018_v34 = vmax.f32 %v2986_v50, 0.0 }
 0x1f6   : > { %v3021_v45 = vmax.f32 %v2989_v30, 0.0  ;;  %v4107_v14 = vpop.f32.mrb[127].mxu0 }
 0x1f7   : > { %v3019_v36 = vmax.f32 %v2987_v62, 0.0  ;;  %v4283_v32 = vpop.f32.mrb[92].mxu1  ;;  %v4108_v5 = vadd.f32 %v4107_v14, %v4106_v4  ;;  %v4394_v37 = vadd.f32 %v5448_v43, %v4105_v21 }
 0x1f8   : > { %v3681_v26 = vpack.c.bf16 %v3021_v45, %v3020_v51  ;;  %v4368_v29 = vadd.f32 %v5578_v41, %v4283_v32  ;;  %v2860_v27 = vpop.f32.mrb[93].mxu1 }
 0x1f9   : > { %v3676_v23 = vpack.c.bf16 %v3019_v36, %v3018_v34  ;;  %v4372_v33 = vadd.f32 %v5573_v55, %v2860_v27  ;;  %v4284_v31 = vpop.f32.mrb[94].mxu1  ;;  %v4400_v1 = vadd.f32 %v5450_v28, %v4108_v5 }
 0x1fa   : > { %3738 = vst [vmem:[%s5605_s9 + $0x28] sm:$0xff] %v3681_v26   ;;  %v2992_v19 = vadd.f32 %v4368_v29, %v5586_v6  ;;  %v4376_v20 = vadd.f32 %v5581_v18, %v4284_v31  ;;  %v2863_v63 = vpop.f32.mrb[95].mxu1 }
 0x1fb   : > { %3737 = vst [vmem:[%s5605_s9 + $0x20] sm:$0xff] %v3676_v23   ;;  %v2990_v57 = vadd.f32 %v4372_v33, %v5586_v6  ;;  %v4380_v41 = vadd.f32 %v5575_v13, %v2863_v63  ;;  %v4109_v43 = vpop.f32.mrb[128].mxu0 }
 0x1fc   : > { %v2993_v58 = vadd.f32 %v4376_v20, %v5586_v6  ;;  %v4110_v55 = vpop.f32.mrb[129].mxu0  ;;  %v3024_v60 = vmax.f32 %v2992_v19, 0.0 }
 0x1fd   : > { %v2991_v38 = vadd.f32 %v4380_v41, %v5586_v6  ;;  %v4111_v11 = vadd.f32 %v4110_v55, %v4109_v43  ;;  %v4112_v54 = vpop.f32.mrb[130].mxu0  ;;  %v3022_v18 = vmax.f32 %v2990_v57, 0.0 }
 0x1fe   : > { %v3025_v17 = vmax.f32 %v2993_v58, 0.0  ;;  %v4113_v61 = vpop.f32.mrb[131].mxu0 }
 0x1ff   : > { %v3023_v2 = vmax.f32 %v2991_v38, 0.0  ;;  %v4287_v28 = vpop.f32.mrb[0].mxu1  ;;  %v4114_v24 = vadd.f32 %v4113_v61, %v4112_v54  ;;  %v4409_v12 = vadd.f32 %v5469_v25, %v4111_v11 }
 0x200   : > { %v3691_v22 = vpack.c.bf16 %v3025_v17, %v3024_v60  ;;  %v4383_v52 = vadd.f32 %v5609_v7, %v4287_v28  ;;  %v2876_v13 = vpop.f32.mrb[1].mxu1 }
 0x201   : > { %v3686_v53 = vpack.c.bf16 %v3023_v2, %v3022_v18  ;;  %v4386_v47 = vadd.f32 %v5589_v10, %v2876_v13  ;;  %v4288_v15 = vpop.f32.mrb[2].mxu1  ;;  %v4415_v30 = vadd.f32 %v5472_v0, %v4114_v24 }
 0x202   : > { %3740 = vst [vmem:[%s5605_s9 + $0x38] sm:$0xff] %v3691_v22   ;;  %v2996_v9 = vadd.f32 %v4383_v52, %v5586_v6  ;;  %v4389_v50 = vadd.f32 %v5616_v40, %v4288_v15  ;;  %v2879_v8 = vpop.f32.mrb[3].mxu1 }
 0x203   : > { %3739 = vst [vmem:[%s5605_s9 + $0x30] sm:$0xff] %v3686_v53   ;;  %v2994_v44 = vadd.f32 %v4386_v47, %v5586_v6  ;;  %v4392_v7 = vadd.f32 %v5595_v39, %v2879_v8  ;;  %v4115_v25 = vpop.f32.mrb[132].mxu0 }
 0x204   : > { %v2997_v62 = vadd.f32 %v4389_v50, %v5586_v6  ;;  %v4116_v10 = vpop.f32.mrb[133].mxu0  ;;  %v3028_v51 = vmax.f32 %v2996_v9, 0.0 }
 0x205   : > { %v2995_v16 = vadd.f32 %v4392_v7, %v5586_v6  ;;  %v4117_v21 = vadd.f32 %v4116_v10, %v4115_v25  ;;  %v4118_v4 = vpop.f32.mrb[134].mxu0  ;;  %v3026_v40 = vmax.f32 %v2994_v44, 0.0 }
 0x206   : > { %v3029_v45 = vmax.f32 %v2997_v62, 0.0  ;;  %v4119_v36 = vpop.f32.mrb[135].mxu0 }
 0x207   : > { %v3027_v34 = vmax.f32 %v2995_v16, 0.0  ;;  %v4291_v0 = vpop.f32.mrb[4].mxu1  ;;  %v4120_v39 = vadd.f32 %v4119_v36, %v4118_v4  ;;  %v4406_v29 = vadd.f32 %v5491_v48, %v4117_v21 }
 0x208   : > { %v3701_v32 = vpack.c.bf16 %v3029_v45, %v3028_v51  ;;  %v4395_v14 = vadd.f32 %v4394_v37, %v4291_v0  ;;  %v2892_v26 = vpop.f32.mrb[5].mxu1 }
 0x209   : > { %v3696_v27 = vpack.c.bf16 %v3027_v34, %v3026_v40  ;;  %v4398_v5 = vadd.f32 %v5625_v59, %v2892_v26  ;;  %v4292_v23 = vpop.f32.mrb[6].mxu1  ;;  %v4412_v20 = vadd.f32 %v5494_v35, %v4120_v39 }
 0x20a   : > { %3742 = vst [vmem:[%s5605_s9 + $0x48] sm:$0xff] %v3701_v32   ;;  %v3000_v33 = vadd.f32 %v4395_v14, %v5586_v6  ;;  %v4401_v31 = vadd.f32 %v4400_v1, %v4292_v23  ;;  %v2895_v19 = vpop.f32.mrb[7].mxu1 }
 0x20b   : > { %3741 = vst [vmem:[%s5605_s9 + $0x40] sm:$0xff] %v3696_v27   ;;  %v2998_v63 = vadd.f32 %v4398_v5, %v5586_v6  ;;  %v4404_v37 = vadd.f32 %v5632_v3, %v2895_v19  ;;  %v4121_v41 = vpop.f32.mrb[136].mxu0 }
 0x20c   : > { %v3001_v57 = vadd.f32 %v4401_v31, %v5586_v6  ;;  %v4122_v58 = vpop.f32.mrb[137].mxu0  ;;  %v3032_v59 = vmax.f32 %v3000_v33, 0.0 }
 0x20d   : > { %v2999_v48 = vadd.f32 %v4404_v37, %v5586_v6  ;;  %v4123_v38 = vadd.f32 %v4122_v58, %v4121_v41  ;;  %v4124_v55 = vpop.f32.mrb[138].mxu0  ;;  %v3030_v1 = vmax.f32 %v2998_v63, 0.0 }
 0x20e   : > { %v3033_v43 = vmax.f32 %v3001_v57, 0.0  ;;  %v4125_v17 = vpop.f32.mrb[139].mxu0 }
 0x20f   : > { %v3031_v60 = vmax.f32 %v2999_v48, 0.0  ;;  %v4295_v35 = vpop.f32.mrb[8].mxu1  ;;  %v4126_v3 = vadd.f32 %v4125_v17, %v4124_v55  ;;  %v4421_v2 = vadd.f32 %v5513_v49, %v4123_v38 }
 0x210   : > { %v3711_v11 = vpack.c.bf16 %v3033_v43, %v3032_v59  ;;  %v4407_v54 = vadd.f32 %v4406_v29, %v4295_v35  ;;  %v2908_v18 = vpop.f32.mrb[9].mxu1 }
 0x211   : > { %v3706_v28 = vpack.c.bf16 %v3031_v60, %v3030_v1  ;;  %v4410_v61 = vadd.f32 %v4409_v12, %v2908_v18  ;;  %v4296_v22 = vpop.f32.mrb[10].mxu1  ;;  %v4427_v53 = vadd.f32 %v5516_v56, %v4126_v3 }
 0x212   : > { %3744 = vst [vmem:[%s5605_s9 + $0x58] sm:$0xff] %v3711_v11   ;;  %v3004_v52 = vadd.f32 %v4407_v54, %v5586_v6  ;;  %v4413_v13 = vadd.f32 %v4412_v20, %v4296_v22  ;;  %v2911_v24 = vpop.f32.mrb[11].mxu1 }
 0x213   : > { %3743 = vst [vmem:[%s5605_s9 + $0x50] sm:$0xff] %v3706_v28   ;;  %v3002_v47 = vadd.f32 %v4410_v61, %v5586_v6  ;;  %v4416_v15 = vadd.f32 %v4415_v30, %v2911_v24  ;;  %v4127_v50 = vpop.f32.mrb[140].mxu0 }
 0x214   : > { %v3005_v9 = vadd.f32 %v4413_v13, %v5586_v6  ;;  %v4128_v49 = vpop.f32.mrb[141].mxu0  ;;  %v3036_v12 = vmax.f32 %v3004_v52, 0.0 }
 0x215   : > { %v3003_v8 = vadd.f32 %v4416_v15, %v5586_v6  ;;  %v4129_v7 = vadd.f32 %v4128_v49, %v4127_v50  ;;  %v4130_v62 = vpop.f32.mrb[142].mxu0  ;;  %v3034_v25 = vmax.f32 %v3002_v47, 0.0 }
 0x216   : > { %v3037_v44 = vmax.f32 %v3005_v9, 0.0  ;;  %v4131_v56 = vpop.f32.mrb[143].mxu0 }
 0x217   : > { %v3035_v16 = vmax.f32 %v3003_v8, 0.0  ;;  %v4299_v10 = vpop.f32.mrb[12].mxu1  ;;  %v4418_v45 = vadd.f32 %v5533_v46, %v4129_v7  ;;  %v4132_v21 = vadd.f32 %v4131_v56, %v4130_v62 }
 0x218   : > { %v3721_v51 = vpack.c.bf16 %v3037_v44, %v3036_v12  ;;  %v2924_v30 = vpop.f32.mrb[13].mxu1 }
 0x219   : > { %v3716_v4 = vpack.c.bf16 %v3035_v16, %v3034_v25  ;;  %v4422_v40 = vadd.f32 %v4421_v2, %v2924_v30  ;;  %v4300_v34 = vpop.f32.mrb[14].mxu1  ;;  %v4419_v0 = vadd.f32 %v4418_v45, %v4299_v10  ;;  %v4424_v36 = vadd.f32 %v5536_v42, %v4132_v21 }
 0x21a   : > { %3746 = vst [vmem:[%s5605_s9 + $0x68] sm:$0xff] %v3721_v51   ;;  %v2927_v32 = vpop.f32.mrb[15].mxu1 }
 0x21b   : > { %3745 = vst [vmem:[%s5605_s9 + $0x60] sm:$0xff] %v3716_v4   ;;  %v3006_v14 = vadd.f32 %v4422_v40, %v5586_v6  ;;  %v4428_v26 = vadd.f32 %v4427_v53, %v2927_v32  ;;  %v3008_v39 = vadd.f32 %v4419_v0, %v5586_v6  ;;  %v4425_v29 = vadd.f32 %v4424_v36, %v4300_v34 }
 0x21d   : > { %v3007_v46 = vadd.f32 %v4428_v26, %v5586_v6  ;;  %v3009_v27 = vadd.f32 %v4425_v29, %v5586_v6  ;;  %v3038_v5 = vmax.f32 %v3006_v14, 0.0  ;;  %v3040_v33 = vmax.f32 %v3008_v39, 0.0 }
 0x21f   : > { %v3039_v23 = vmax.f32 %v3007_v46, 0.0  ;;  %v3041_v31 = vmax.f32 %v3009_v27, 0.0 }
 0x221   : > { %v3726_v19 = vpack.c.bf16 %v3039_v23, %v3038_v5  ;;  %v3731_v20 = vpack.c.bf16 %v3041_v31, %v3040_v33 }
 0x223   : > { %3747 = vst [vmem:[%s5605_s9 + $0x70] sm:$0xff] %v3726_v19   ;;  %3748 = vst [vmem:[%s5605_s9 + $0x78] sm:$0xff] %v3731_v20  }
 0x224 PF: > { %s15_s20 = sadd.s32 1, %s4621_s20   ;;  %s5706_s18 = smov %s4617_s19 }
 0x225   : > { %p12_p5 = scmp.ge.s32.totalorder %s15_s20, 4   ;;  %s5707_s19 = smov %s5709_s21 }
 0x227   :  { %14 = sbr.rel (!%p12_p5) target bundleno = 2 (0x2), region = 90 }

</bundles_post_ra>
